<compile_context>
chip_gen: v7x
topology: tpu7x:2x2x1
jax: 0.10.0
libtpu: 0.0.40
codegen_flags: <defaults>
</compile_context>

<pallas_src>
import functools

import numpy as np

import jax
import jax.numpy as jnp
from jax.experimental import pallas as pl
from jax.experimental.pallas import tpu as pltpu


def _pick_batch_block(n_b, batch_block=None):
    if batch_block is not None:
        assert n_b % batch_block == 0, (n_b, batch_block)
        return batch_block
    # Fold the batch into each grid step (fewer, bigger steps) while keeping
    # >=2 "parallel" grid steps when possible so both v7x TensorCores get work.
    target = max(1, n_b // 2)
    for bb in range(target, 0, -1):
        if n_b % bb == 0:
            return bb
    return 1


def _linear_attention_kernel(x_ref, wk_ref, wqv_ref, wout_ref, bias_ref,
                             mask_ref, o_ref, *, heads, dim_head, n_tok,
                             batch_block, compute_dtype):
    # x_ref   : (Bb, C, n)   batch-block of items, spatial on the lane axis
    # wk_ref  : (H, C)       to_qkv rows producing k
    # wqv_ref : (2H, C)      to_qkv rows producing q (first H) and v (last H)
    # wout_ref: (C, H)       to_out 1x1-conv weight
    # bias_ref: (C, 1)       to_out bias (f32)
    # mask_ref: (H, H)       0/1 block-diagonal head mask (f32, constant)
    # o_ref   : (Bb, C, n)
    hidden = heads * dim_head
    f32 = jnp.float32
    cast = lambda a: a.astype(compute_dtype)

    # Flatten the batch block onto the lane axis: (Bb, C, n) -> (C, Bb*n).
    if batch_block == 1:
        x_all = x_ref[0]
    else:
        x_all = jnp.concatenate([x_ref[b] for b in range(batch_block)],
                                axis=-1)

    # k first: its softmax can overlap the q/v GEMM (different VLIW slots).
    k_all = jax.lax.dot_general(wk_ref[...], x_all, (((1,), (0,)), ((), ())),
                                preferred_element_type=f32)       # (H, Bb*n)
    qv_all = jax.lax.dot_general(wqv_ref[...], x_all, (((1,), (0,)), ((), ())),
                                 preferred_element_type=f32)      # (2H, Bb*n)
    q_all = qv_all[:hidden]                                        # (H, Bb*n)
    v_all = qv_all[hidden:]                                        # (H, Bb*n)

    mask = mask_ref[...]                                           # (H, H)

    # Per-item attention (softmax is per item over its own n tokens).  The
    # trip count is a small static Python int, so all slices are static and
    # 128-lane aligned (n_tok is a multiple of 128 here).
    outs = []
    for b in range(batch_block):
        sl = slice(b * n_tok, (b + 1) * n_tok)
        k = k_all[:, sl]
        q = q_all[:, sl]
        v = v_all[:, sl]

        # numerically stable softmax over the spatial (lane) axis, f32.
        k = jnp.exp(k - jnp.max(k, axis=-1, keepdims=True))
        k = k / jnp.sum(k, axis=-1, keepdims=True)

        # ctxT[e, d] = sum_n v[e, n] * k[d, n]   (== context[d, e])
        ctxT = jax.lax.dot_general(cast(v), cast(k), (((1,), (1,)), ((), ())),
                                   preferred_element_type=f32)     # (H, H)
        ctxT = ctxT * mask   # zero cross-head blocks (mask is symmetric)

        # out[e, n] = sum_d ctxT[e, d] * q[d, n]  -- canonical [M,K]x[K,N]
        outs.append(jax.lax.dot_general(cast(ctxT), cast(q),
                                        (((1,), (0,)), ((), ())),
                                        preferred_element_type=f32))
    out_all = outs[0] if batch_block == 1 else jnp.concatenate(outs, axis=-1)

    # to_out 1x1 conv + bias over the whole (H, Bb*n) slab; lane-dense stores.
    y = jax.lax.dot_general(wout_ref[...], cast(out_all),
                            (((1,), (0,)), ((), ())),
                            preferred_element_type=f32)            # (C, Bb*n)
    y = y + bias_ref[...]
    for b in range(batch_block):
        o_ref[b] = y[:, b * n_tok:(b + 1) * n_tok].astype(o_ref.dtype)


def linear_attention_forward(x_nchw, w_qkv, w_out, b_out, *, heads=4,
                             dim_head=32, batch_block=None,
                             compute_dtype=jnp.float32):
    """LinearAttention forward.

    x_nchw: (N, C, H, W) float32
    w_qkv : (3*heads*dim_head, C)   -- Conv2d(dim, 3*hidden, 1, bias=False)
    w_out : (C, heads*dim_head)     -- Conv2d(hidden, dim, 1)
    b_out : (C,)
    compute_dtype: dtype of MXU operands (f32 or bfloat16); accumulation f32.
    """
    n_b, c, h, w = x_nchw.shape
    hidden = heads * dim_head
    assert w_qkv.shape == (3 * hidden, c)
    assert w_out.shape == (c, hidden)
    assert b_out.shape == (c,)
    n_tok = h * w

    bb = _pick_batch_block(n_b, batch_block)
    n_steps = n_b // bb

    # Free reshapes only: channels-first, spatial flattened onto the lane axis.
    x_flat = x_nchw.reshape(n_b, c, n_tok).astype(compute_dtype)
    # Split to_qkv so the kernel produces k before q/v (row order: q | k | v).
    w_k = w_qkv[hidden:2 * hidden].astype(compute_dtype)             # (H, C)
    w_qv = jnp.concatenate([w_qkv[:hidden], w_qkv[2 * hidden:]],
                           axis=0).astype(compute_dtype)             # (2H, C)
    w_o = w_out.astype(compute_dtype)                                # (C, H)
    b2d = b_out.reshape(c, 1).astype(jnp.float32)
    # Trace-time block-diagonal head mask (heads / dim_head are static).
    head_id = np.arange(hidden) // dim_head
    mask = jnp.asarray((head_id[:, None] == head_id[None, :])
                       .astype(np.float32))                          # (H, H)

    kernel = functools.partial(_linear_attention_kernel, heads=heads,
                               dim_head=dim_head, n_tok=n_tok,
                               batch_block=bb, compute_dtype=compute_dtype)
    y = pl.pallas_call(
        kernel,
        out_shape=jax.ShapeDtypeStruct((n_b, c, n_tok), jnp.float32),
        grid=(n_steps,),
        in_specs=[
            pl.BlockSpec((bb, c, n_tok), lambda i: (i, 0, 0)),
            pl.BlockSpec((hidden, c), lambda i: (0, 0)),
            pl.BlockSpec((2 * hidden, c), lambda i: (0, 0)),
            pl.BlockSpec((c, hidden), lambda i: (0, 0)),
            pl.BlockSpec((c, 1), lambda i: (0, 0)),
            pl.BlockSpec((hidden, hidden), lambda i: (0, 0)),
        ],
        out_specs=pl.BlockSpec((bb, c, n_tok), lambda i: (i, 0, 0)),
        compiler_params=pltpu.CompilerParams(
            dimension_semantics=("parallel",)),
    )(x_flat, w_k, w_qv, w_o, b2d, mask)
    return y.reshape(n_b, c, h, w)


def _reference_linear_attention(x, w_qkv, w_out, b_out, heads, dim_head):
    """Pure-JAX reference mirroring the PyTorch module."""
    b, c, h, w = x.shape
    hidden = heads * dim_head
    n = h * w
    hp = jax.lax.Precision.HIGHEST
    qkv = jnp.einsum('oc,bcn->bon', w_qkv, x.reshape(b, c, n), precision=hp)
    qkv = qkv.reshape(b, 3, heads, dim_head, n)
    q, k, v = qkv[:, 0], qkv[:, 1], qkv[:, 2]
    k = jax.nn.softmax(k, axis=-1)
    context = jnp.einsum('bhdn,bhen->bhde', k, v, precision=hp)
    out = jnp.einsum('bhde,bhdn->bhen', context, q, precision=hp)
    out = out.reshape(b, hidden, n)
    y = jnp.einsum('oc,bcn->bon', w_out, out, precision=hp)
    y = y + b_out[None, :, None]
    return y.reshape(b, c, h, w)


if __name__ == "__main__":
    key = jax.random.PRNGKey(0)
    kx, kq, ko, kb = jax.random.split(key, 4)

    B, DIM, H, W = 4, 32, 16, 16           # n = 256 tokens per item
    HEADS, DIM_HEAD = 4, 32                # hidden_dim = 128 (module defaults)
    HIDDEN = HEADS * DIM_HEAD

    x = jax.random.normal(kx, (B, DIM, H, W), dtype=jnp.float32)
    # 1x1-conv weights (PyTorch Conv2d (out, in, 1, 1) with the 1x1 squeezed).
    w_qkv = jax.random.normal(kq, (3 * HIDDEN, DIM), jnp.float32) / (DIM ** 0.5)
    w_out = jax.random.normal(ko, (DIM, HIDDEN), jnp.float32) / (HIDDEN ** 0.5)
    b_out = 0.1 * jax.random.normal(kb, (DIM,), jnp.float32)

    y_ref = jax.block_until_ready(
        _reference_linear_attention(x, w_qkv, w_out, b_out, HEADS, DIM_HEAD))

    # f32 MXU-operand path (default): tight tolerance vs HIGHEST-precision ref.
    y = jax.block_until_ready(
        linear_attention_forward(x, w_qkv, w_out, b_out,
                                 heads=HEADS, dim_head=DIM_HEAD))
    assert y.shape == (B, DIM, H, W), y.shape
    max_err = float(jnp.max(jnp.abs(y - y_ref)))
    assert jnp.allclose(y, y_ref, atol=5e-3, rtol=5e-3), max_err

    # bf16 MXU-operand path (f32 accumulation): looser statistical tolerance
    # since the reference runs in HIGHEST f32 precision.
    y_bf = jax.block_until_ready(
        linear_attention_forward(x, w_qkv, w_out, b_out, heads=HEADS,
                                 dim_head=DIM_HEAD,
                                 compute_dtype=jnp.bfloat16))
    rel = float(jnp.linalg.norm(y_bf.astype(jnp.float32) - y_ref)
                / jnp.linalg.norm(y_ref))
    assert rel < 0.08, rel

    print("KERNEL_OK")
</pallas_src>

<mosaic_0001>
module attributes {stable_mosaic.version = 11 : i64} {
  func.func @_linear_attention_kernel(%arg0: i32, %arg1: memref<2x32x256xf32, #tpu.memory_space<vmem>>, %arg2: memref<128x32xf32, #tpu.memory_space<vmem>>, %arg3: memref<256x32xf32, #tpu.memory_space<vmem>>, %arg4: memref<32x128xf32, #tpu.memory_space<vmem>>, %arg5: memref<32x1xf32, #tpu.memory_space<vmem>>, %arg6: memref<128x128xf32, #tpu.memory_space<vmem>>, %arg7: memref<2x32x256xf32, #tpu.memory_space<vmem>>) attributes {dimension_semantics = [#tpu.dimension_semantics<parallel>], iteration_bounds = array<i64: 2>, scalar_prefetch = 0 : i64, scratch_operands = 0 : i64, tpu.core_type = #tpu.core_type<tc>, window_params = [{transform_indices = @transform_0, window_bounds = array<i64: 2, 32, 256>}, {pipeline_mode = #tpu.pipeline_mode<synchronous>, transform_indices = @transform_1, window_bounds = array<i64: 128, 32>}, {pipeline_mode = #tpu.pipeline_mode<synchronous>, transform_indices = @transform_2, window_bounds = array<i64: 256, 32>}, {pipeline_mode = #tpu.pipeline_mode<synchronous>, transform_indices = @transform_3, window_bounds = array<i64: 32, 128>}, {pipeline_mode = #tpu.pipeline_mode<synchronous>, transform_indices = @transform_4, window_bounds = array<i64: 32, 1>}, {pipeline_mode = #tpu.pipeline_mode<synchronous>, transform_indices = @transform_5, window_bounds = array<i64: 128, 128>}, {transform_indices = @transform_6, window_bounds = array<i64: 2, 32, 256>}]} {
    %c0 = arith.constant 0 : index
    %c0_0 = arith.constant 0 : index
    %c0_1 = arith.constant 0 : index
    %0 = vector.load %arg1[%c0, %c0_0, %c0_1] : memref<2x32x256xf32, #tpu.memory_space<vmem>>, vector<1x32x256xf32>
    %1 = vector.shape_cast %0 : vector<1x32x256xf32> to vector<32x256xf32>
    %c1 = arith.constant 1 : index
    %c0_2 = arith.constant 0 : index
    %c0_3 = arith.constant 0 : index
    %2 = vector.load %arg1[%c1, %c0_2, %c0_3] : memref<2x32x256xf32, #tpu.memory_space<vmem>>, vector<1x32x256xf32>
    %3 = vector.shape_cast %2 : vector<1x32x256xf32> to vector<32x256xf32>
    %4 = tpu.concatenate %1, %3 in 1 : vector<32x256xf32>, vector<32x256xf32> -> vector<32x512xf32>
    %c0_4 = arith.constant 0 : index
    %c0_5 = arith.constant 0 : index
    %5 = vector.load %arg2[%c0_4, %c0_5] : memref<128x32xf32, #tpu.memory_space<vmem>>, vector<128x32xf32>
    %cst = arith.constant dense<0.000000e+00> : vector<128x512xf32>
    %6 = tpu.matmul %5, %4, %cst {dimension_numbers = #tpu.dot_dimension_numbers<[1], [0], [0], [1], [0, 0, 1, 1], [], []>} : vector<128x32xf32>, vector<32x512xf32>, vector<128x512xf32> -> vector<128x512xf32>
    %c0_6 = arith.constant 0 : index
    %c0_7 = arith.constant 0 : index
    %7 = vector.load %arg3[%c0_6, %c0_7] : memref<256x32xf32, #tpu.memory_space<vmem>>, vector<256x32xf32>
    %cst_8 = arith.constant dense<0.000000e+00> : vector<256x512xf32>
    %8 = tpu.matmul %7, %4, %cst_8 {dimension_numbers = #tpu.dot_dimension_numbers<[1], [0], [0], [1], [0, 0, 1, 1], [], []>} : vector<256x32xf32>, vector<32x512xf32>, vector<256x512xf32> -> vector<256x512xf32>
    %9 = vector.extract_strided_slice %8 {offsets = [0, 0], sizes = [128, 512], strides = [1, 1]} : vector<256x512xf32> to vector<128x512xf32>
    %10 = vector.extract_strided_slice %8 {offsets = [128, 0], sizes = [128, 512], strides = [1, 1]} : vector<256x512xf32> to vector<128x512xf32>
    %c0_9 = arith.constant 0 : index
    %c0_10 = arith.constant 0 : index
    %11 = vector.load %arg6[%c0_9, %c0_10] : memref<128x128xf32, #tpu.memory_space<vmem>>, vector<128x128xf32>
    %12 = vector.extract_strided_slice %6 {offsets = [0, 0], sizes = [128, 256], strides = [1, 1]} : vector<128x512xf32> to vector<128x256xf32>
    %13 = vector.extract_strided_slice %9 {offsets = [0, 0], sizes = [128, 256], strides = [1, 1]} : vector<128x512xf32> to vector<128x256xf32>
    %14 = vector.extract_strided_slice %10 {offsets = [0, 0], sizes = [128, 256], strides = [1, 1]} : vector<128x512xf32> to vector<128x256xf32>
    %cst_11 = arith.constant dense<0xFF800000> : vector<128xf32>
    %15 = vector.multi_reduction <maximumf>, %12, %cst_11 [1] : vector<128x256xf32> to vector<128xf32>
    %16 = vector.shape_cast %15 : vector<128xf32> to vector<128x1xf32>
    %17 = vector.broadcast %16 : vector<128x1xf32> to vector<128x256xf32>
    %18 = arith.subf %12, %17 : vector<128x256xf32>
    %19 = math.exp %18 : vector<128x256xf32>
    %cst_12 = arith.constant dense<0.000000e+00> : vector<128xf32>
    %20 = vector.multi_reduction <add>, %19, %cst_12 [1] : vector<128x256xf32> to vector<128xf32>
    %21 = vector.shape_cast %20 : vector<128xf32> to vector<128x1xf32>
    %22 = vector.broadcast %21 : vector<128x1xf32> to vector<128x256xf32>
    %23 = arith.divf %19, %22 : vector<128x256xf32>
    %cst_13 = arith.constant dense<0.000000e+00> : vector<128x128xf32>
    %24 = tpu.matmul %14, %23, %cst_13 {dimension_numbers = #tpu.dot_dimension_numbers<[1], [1], [0], [0], [0, 0, 1, 0], [], []>} : vector<128x256xf32>, vector<128x256xf32>, vector<128x128xf32> -> vector<128x128xf32>
    %25 = arith.mulf %24, %11 : vector<128x128xf32>
    %cst_14 = arith.constant dense<0.000000e+00> : vector<128x256xf32>
    %26 = tpu.matmul %25, %13, %cst_14 {dimension_numbers = #tpu.dot_dimension_numbers<[1], [0], [0], [1], [0, 0, 1, 1], [], []>} : vector<128x128xf32>, vector<128x256xf32>, vector<128x256xf32> -> vector<128x256xf32>
    %27 = vector.extract_strided_slice %6 {offsets = [0, 256], sizes = [128, 256], strides = [1, 1]} : vector<128x512xf32> to vector<128x256xf32>
    %28 = vector.extract_strided_slice %9 {offsets = [0, 256], sizes = [128, 256], strides = [1, 1]} : vector<128x512xf32> to vector<128x256xf32>
    %29 = vector.extract_strided_slice %10 {offsets = [0, 256], sizes = [128, 256], strides = [1, 1]} : vector<128x512xf32> to vector<128x256xf32>
    %cst_15 = arith.constant dense<0xFF800000> : vector<128xf32>
    %30 = vector.multi_reduction <maximumf>, %27, %cst_15 [1] : vector<128x256xf32> to vector<128xf32>
    %31 = vector.shape_cast %30 : vector<128xf32> to vector<128x1xf32>
    %32 = vector.broadcast %31 : vector<128x1xf32> to vector<128x256xf32>
    %33 = arith.subf %27, %32 : vector<128x256xf32>
    %34 = math.exp %33 : vector<128x256xf32>
    %cst_16 = arith.constant dense<0.000000e+00> : vector<128xf32>
    %35 = vector.multi_reduction <add>, %34, %cst_16 [1] : vector<128x256xf32> to vector<128xf32>
    %36 = vector.shape_cast %35 : vector<128xf32> to vector<128x1xf32>
    %37 = vector.broadcast %36 : vector<128x1xf32> to vector<128x256xf32>
    %38 = arith.divf %34, %37 : vector<128x256xf32>
    %cst_17 = arith.constant dense<0.000000e+00> : vector<128x128xf32>
    %39 = tpu.matmul %29, %38, %cst_17 {dimension_numbers = #tpu.dot_dimension_numbers<[1], [1], [0], [0], [0, 0, 1, 0], [], []>} : vector<128x256xf32>, vector<128x256xf32>, vector<128x128xf32> -> vector<128x128xf32>
    %40 = arith.mulf %39, %11 : vector<128x128xf32>
    %cst_18 = arith.constant dense<0.000000e+00> : vector<128x256xf32>
    %41 = tpu.matmul %40, %28, %cst_18 {dimension_numbers = #tpu.dot_dimension_numbers<[1], [0], [0], [1], [0, 0, 1, 1], [], []>} : vector<128x128xf32>, vector<128x256xf32>, vector<128x256xf32> -> vector<128x256xf32>
    %42 = tpu.concatenate %26, %41 in 1 : vector<128x256xf32>, vector<128x256xf32> -> vector<128x512xf32>
    %c0_19 = arith.constant 0 : index
    %c0_20 = arith.constant 0 : index
    %43 = vector.load %arg4[%c0_19, %c0_20] : memref<32x128xf32, #tpu.memory_space<vmem>>, vector<32x128xf32>
    %cst_21 = arith.constant dense<0.000000e+00> : vector<32x512xf32>
    %44 = tpu.matmul %43, %42, %cst_21 {dimension_numbers = #tpu.dot_dimension_numbers<[1], [0], [0], [1], [0, 0, 1, 1], [], []>} : vector<32x128xf32>, vector<128x512xf32>, vector<32x512xf32> -> vector<32x512xf32>
    %c0_22 = arith.constant 0 : index
    %c0_23 = arith.constant 0 : index
    %45 = vector.load %arg5[%c0_22, %c0_23] : memref<32x1xf32, #tpu.memory_space<vmem>>, vector<32x1xf32>
    %46 = vector.broadcast %45 : vector<32x1xf32> to vector<32x512xf32>
    %47 = arith.addf %44, %46 : vector<32x512xf32>
    %48 = vector.extract_strided_slice %47 {offsets = [0, 0], sizes = [32, 256], strides = [1, 1]} : vector<32x512xf32> to vector<32x256xf32>
    %c0_24 = arith.constant 0 : index
    %c0_25 = arith.constant 0 : index
    %c0_26 = arith.constant 0 : index
    %49 = vector.load %arg7[%c0_24, %c0_25, %c0_26] : memref<2x32x256xf32, #tpu.memory_space<vmem>>, vector<1x32x256xf32>
    %50 = vector.shape_cast %49 : vector<1x32x256xf32> to vector<32x256xf32>
    %51 = vector.shape_cast %48 : vector<32x256xf32> to vector<1x32x256xf32>
    tpu.vector_store %arg7[%c0_24, %c0_25, %c0_26], %51 {strides = array<i32>} : memref<2x32x256xf32, #tpu.memory_space<vmem>>, vector<1x32x256xf32>,
    %52 = vector.extract_strided_slice %47 {offsets = [0, 256], sizes = [32, 256], strides = [1, 1]} : vector<32x512xf32> to vector<32x256xf32>
    %c1_27 = arith.constant 1 : index
    %c0_28 = arith.constant 0 : index
    %c0_29 = arith.constant 0 : index
    %53 = vector.load %arg7[%c1_27, %c0_28, %c0_29] : memref<2x32x256xf32, #tpu.memory_space<vmem>>, vector<1x32x256xf32>
    %54 = vector.shape_cast %53 : vector<1x32x256xf32> to vector<32x256xf32>
    %55 = vector.shape_cast %52 : vector<32x256xf32> to vector<1x32x256xf32>
    tpu.vector_store %arg7[%c1_27, %c0_28, %c0_29], %55 {strides = array<i32>} : memref<2x32x256xf32, #tpu.memory_space<vmem>>, vector<1x32x256xf32>,
    return
  }
  func.func @transform_0(%arg0: i32) -> (i32, i32, i32) {
    %c0_i32 = arith.constant 0 : i32
    %c0_i32_0 = arith.constant 0 : i32
    %c0_i32_1 = arith.constant 0 : i32
    return %arg0, %c0_i32, %c0_i32_0 : i32, i32, i32
  }
  func.func @transform_1(%arg0: i32) -> (i32, i32) {
    %c0_i32 = arith.constant 0 : i32
    %c0_i32_0 = arith.constant 0 : i32
    %c0_i32_1 = arith.constant 0 : i32
    return %c0_i32, %c0_i32_0 : i32, i32
  }
  func.func @transform_2(%arg0: i32) -> (i32, i32) {
    %c0_i32 = arith.constant 0 : i32
    %c0_i32_0 = arith.constant 0 : i32
    %c0_i32_1 = arith.constant 0 : i32
    return %c0_i32, %c0_i32_0 : i32, i32
  }
  func.func @transform_3(%arg0: i32) -> (i32, i32) {
    %c0_i32 = arith.constant 0 : i32
    %c0_i32_0 = arith.constant 0 : i32
    %c0_i32_1 = arith.constant 0 : i32
    return %c0_i32, %c0_i32_0 : i32, i32
  }
  func.func @transform_4(%arg0: i32) -> (i32, i32) {
    %c0_i32 = arith.constant 0 : i32
    %c0_i32_0 = arith.constant 0 : i32
    %c0_i32_1 = arith.constant 0 : i32
    return %c0_i32, %c0_i32_0 : i32, i32
  }
  func.func @transform_5(%arg0: i32) -> (i32, i32) {
    %c0_i32 = arith.constant 0 : i32
    %c0_i32_0 = arith.constant 0 : i32
    %c0_i32_1 = arith.constant 0 : i32
    return %c0_i32, %c0_i32_0 : i32, i32
  }
  func.func @transform_6(%arg0: i32) -> (i32, i32, i32) {
    %c0_i32 = arith.constant 0 : i32
    %c0_i32_0 = arith.constant 0 : i32
    %c0_i32_1 = arith.constant 0 : i32
    return %arg0, %c0_i32, %c0_i32_0 : i32, i32, i32
  }
}

</mosaic_0001>

<bundles_post_ra>
// kernel: tpu_custom_call.1
= control target key start
LH: loop header
LB: loop body
LE: loop exit
PB: predicated region body
PF: predicated region fallthrough
CT: control target
= control target key end

     0   :  { %11 = vsyncpa [#allocation3], 0  ;;  %s4973_s0 = inlined_call_operand.vmem [shape: f32[4,32,256], index: 0, kind: input, shape index: {}]   ;;  %s4974_s1 = inlined_call_operand.vmem [shape: f32[128,32], index: 1, kind: input, shape index: {}]   ;;  %s4975_s2 = inlined_call_operand.vmem [shape: f32[256,32], index: 2, kind: input, shape index: {}]   ;;  %s4976_s3 = inlined_call_operand.vmem [shape: f32[32,128], index: 3, kind: input, shape index: {}]   ;;  %s4977_s4 = inlined_call_operand.vmem [shape: f32[32,1], index: 4, kind: input, shape index: {}]   ;;  %s4978_s5 = inlined_call_operand.vmem [shape: f32[128,128], index: 5, kind: input, shape index: {}]   ;;  %s4979_s6 = inlined_call_operand.hbm [shape: f32[4,32,256], index: 6, kind: output, shape index: {}]  }
   0x1   :  { %13 = vsyncpa [#allocation3 + $0x1], 0  ;;  %s3436_s21 = smov 0   ;;  %s3438_s22 = smov 0  }
   0x2   :  { %s3440_s23 = smov 0   ;;  %s3442_s24 = smov 0  }
   0x3 LB: > { %s3457_s25 = sadd.s32 4294967295, %s3394_s24   ;;  %s2742_s26 = sadd.s32 4294967294, %s3394_s24   ;;  %s3394_s24 = sphi %s3442_s24, %s5210_s24   ;;  %s3390_s23 = sphi %s3440_s23, %s5209_s23   ;;  %s3386_s22 = sphi %s3438_s22, %s5208_s22   ;;  %s3382_s21 = sphi %s3436_s21, %s5207_s21  }
   0x4   : > { %s3461_s27 = sadd.s32 1, %s3394_s24   ;;  %s157_s28 = sadd.s32 1, %s3390_s23 }
   0x5   : > { %s154_s29 = ssub.s32 %s3394_s24, %s3461_s27  ;;  %p167_p0 = scmp.ne.s32.totalorder %s3390_s23, %s3386_s22 }
   0x6   : > { %p155_p1 = scmp.eq.s32.totalorder %s154_s29, 0  ;;  %p168_p2 = scmp.eq.s32.totalorder %s3457_s25, 1 }
   0x7   : > { %p173_p3 = scmp.ne.s32.totalorder %s3386_s22, %s3382_s21  ;;  %p174_p4 = scmp.eq.s32.totalorder %s2742_s26, 1 }
   0x8   : > { %s3472_s30 = scalar_select %p155_p1, %s3390_s23, %s157_s28  }
   0x9   : > { %p3474_p5 = por %p168_p2, %p167_p0  ;;  %p3478_p6 = por %p174_p4, %p173_p3 }
   0xa   : > { %p2745_p7 = scmp.ge.s32.totalorder %s3394_s24, 1  ;;  %p217_p8 = scmp.lt.s32.totalorder %s3394_s24, 3 }
   0xc   : > { %p218_p9 = pnand %p2745_p7, %p217_p8 }
   0xe   : > { %221 = sbr.rel (%p218_p9) target bundleno = 1506 (0x5e2), region = 44 }
  0x15   : > { %s2747_s9 = sshll.u32 %s3457_s25, 1  ;;  %v4980_v0 = vmov 0.0   ;;  %v273_v25 = vld [vmem:[%s4974_s1] sm:$0xff]  ;;  %vm289_vm0 = vcmask 261120   ;;  %v274_v26 = vld [vmem:[%s4974_s1 + $0x8] sm:$0xff]  ;;  %v275_v27 = vld [vmem:[%s4974_s1 + $0x10] sm:$0xff] }
  0x16   : > { %p249_p10 = scmp.lt.s32.totalorder %s2747_s9, 3  ;;  %402 = vmatprep.mubr.f32.mxu0 %v4980_v0  ;;  %563 = vmatprep.mubr.f32.mxu1 %v4980_v0  ;;  %v276_v28 = vld [vmem:[%s4974_s1 + $0x18] sm:$0xff]  ;;  %v277_v29 = vld [vmem:[%s4974_s1 + $0x20] sm:$0xff]  ;;  %v278_v30 = vld [vmem:[%s4974_s1 + $0x28] sm:$0xff]  ;;  %s245_s29 = sand.u32 1, %s3386_s22  }
  0x17   : > { %v279_v31 = vld [vmem:[%s4974_s1 + $0x30] sm:$0xff]  ;;  %v280_v32 = vld [vmem:[%s4974_s1 + $0x38] sm:$0xff]  ;;  %v281_v33 = vld [vmem:[%s4974_s1 + $0x40] sm:$0xff]  ;;  %s2870_s11 = sshll.u32 %s3457_s25, 11  ;;  %s4932_s25 = scalar_lea.sflag [#allocation3], %s245_s29 }
  0x18   : > { %s5212_s9 = smov (!%p249_p10, %s2747_s9), 3  ;;  %v282_v34 = vld [vmem:[%s4974_s1 + $0x48] sm:$0xff]  ;;  %v283_v35 = vld [vmem:[%s4974_s1 + $0x50] sm:$0xff]  ;;  %v284_v36 = vld [vmem:[%s4974_s1 + $0x58] sm:$0xff]  ;;  %s4924_s15 = scalar_lea.hbm %s4979_s6, %s2870_s11 }
  0x19   : > { %s2868_s10 = sshll.u32 %s5212_s9, 6  ;;  %v285_v37 = vld [vmem:[%s4974_s1 + $0x60] sm:$0xff]  ;;  %v286_v38 = vld [vmem:[%s4974_s1 + $0x68] sm:$0xff]  ;;  %v287_v39 = vld [vmem:[%s4974_s1 + $0x70] sm:$0xff]  ;;  %s2746_s9 = sshll.u32 %s245_s29, 7 }
  0x1a   : > { %s253_s13 = scalar_lea.vmem %s4973_s0, %s2868_s10  ;;  %v288_v40 = vld [vmem:[%s4974_s1 + $0x78] sm:$0xff]  ;;  %v660_v41 = vld [vmem:[%s4975_s2] sm:$0xff]  ;;  %v661_v42 = vld [vmem:[%s4975_s2 + $0x8] sm:$0xff]  ;;  %s4903_s10 = scalar_lea.vmem [#allocation2], %s2746_s9 }
  0x1b   : > { %v257_v1 = vld [vmem:[%s253_s13 + $0x8] sm:$0xff]  ;;  %v259_v2 = vld [vmem:[%s253_s13 + $0x18] sm:$0xff]  ;;  %v256_v3 = vld [vmem:[%s253_s13] sm:$0xff]  ;;  %s2680_s12 = sshll.u32 %s4903_s10, 4  ;;  %s3398_s17 = smov [#allocation2]   ;;  %s4926_s12 = int_to_ptr.vmem [resolvable:$true] %s2680_s12 }
  0x1c   : > { %v2871_v4 = vpack.c.bf16 %v259_v2, %v257_v1  ;;  %v258_v5 = vld [vmem:[%s253_s13 + $0x10] sm:$0xff]  ;;  %v261_v6 = vld [vmem:[%s253_s13 + $0x28] sm:$0xff]  ;;  %v263_v7 = vld [vmem:[%s253_s13 + $0x38] sm:$0xff]  ;;  %s3332_s16 = scalar_lea.vmem %s4926_s12, 2048  ;;  %s3336_s18 = sshll.u32 %s3398_s17, 4  ;;  %s3337_s18 = int_to_ptr.vmem [resolvable:$false] %s3336_s18 }
  0x1d   : > { %v2873_v8 = vpack.c.bf16 %v258_v5, %v256_v3  ;;  %v2875_v9 = vpack.c.bf16 %v263_v7, %v261_v6  ;;  %v260_v10 = vld [vmem:[%s253_s13 + $0x20] sm:$0xff]  ;;  %v262_v11 = vld [vmem:[%s253_s13 + $0x30] sm:$0xff]  ;;  %v2751_v12 = vld [vmem:[%s253_s13 + $0x48] sm:$0xff]  ;;  %p3333_p11 = scmp.ne.s32.totalorder %s4926_s12, %s3332_s16  ;;  %s3338_s19 = scalar_lea.vmem %s3337_s18, 4096 }
  0x1e   : > { %2872 = vmatprep.subr.bf16.mxu0 %v2871_v4  ;;  %v2753_v13 = vld [vmem:[%s253_s13 + $0x58] sm:$0xff]  ;;  %v2750_v14 = vld [vmem:[%s253_s13 + $0x40] sm:$0xff]  ;;  %v2752_v15 = vld [vmem:[%s253_s13 + $0x50] sm:$0xff]  ;;  %v2877_v16 = vpack.c.bf16 %v262_v11, %v260_v10  ;;  %p3339_p0 = scmp.lt.s32.totalorder %s4926_s12, %s3337_s18  ;;  %p3340_p1 = scmp.lt.s32.totalorder %s3338_s19, %s3332_s16 }
  0x1f   : > { %2874 = vmatpush1.bf16.msra.mxu0 %v2873_v8  ;;  %v2879_v17 = vpack.c.bf16 %v2753_v13, %v2751_v12  ;;  %v2881_v18 = vpack.c.bf16 %v2752_v15, %v2750_v14  ;;  %v2755_v19 = vld [vmem:[%s253_s13 + $0x68] sm:$0xff]  ;;  %v2757_v20 = vld [vmem:[%s253_s13 + $0x78] sm:$0xff]  ;;  %v2754_v21 = vld [vmem:[%s253_s13 + $0x60] sm:$0xff]  ;;  %p3334_p12 = pnand %p3333_p11, %p3474_p5 }
  0x20   : > { %2876 = vmatprep.subr.bf16.mxu0 %v2875_v9  ;;  %v2883_v22 = vpack.c.bf16 %v2757_v20, %v2755_v19  ;;  %v2756_v23 = vld [vmem:[%s253_s13 + $0x70] sm:$0xff]  ;;  %v663_v44 = vld [vmem:[%s4975_s2 + $0x18] sm:$0xff]  ;;  %v664_v45 = vld [vmem:[%s4975_s2 + $0x20] sm:$0xff]  ;;  %p3341_p2 = por %p3340_p1, %p3339_p0 }
  0x21   : > { %2880 = vmatprep.subr.bf16.mxu1 %v2879_v17  ;;  %v2885_v24 = vpack.c.bf16 %v2756_v23, %v2754_v21  ;;  %v662_v43 = vld [vmem:[%s4975_s2 + $0x10] sm:$0xff]  ;;  %v665_v46 = vld [vmem:[%s4975_s2 + $0x28] sm:$0xff]  ;;  %v667_v48 = vld [vmem:[%s4975_s2 + $0x38] sm:$0xff]  ;;  %p3335_p13 = pneg %p3334_p12 }
  0x22   : > { %2882 = vmatpush1.bf16.msra.mxu1 %v2881_v18  ;;  %v666_v47 = vld [vmem:[%s4975_s2 + $0x30] sm:$0xff]  ;;  %v668_v49 = vld [vmem:[%s4975_s2 + $0x40] sm:$0xff]  ;;  %v669_v14 = vld [vmem:[%s4975_s2 + $0x48] sm:$0xff] }
  0x23   : > { %2878 = vmatpush1.bf16.msra.mxu0 %v2877_v16  ;;  %2884 = vmatprep.subr.bf16.mxu1 %v2883_v22  ;;  %v670_v21 = vld [vmem:[%s4975_s2 + $0x50] sm:$0xff]  ;;  %p3342_p3 = pnand %p3341_p2, %p3335_p13 }
  0x24   : > { %2888 = vmatprep.subr.bf16.mxu0 %v2871_v4 }
  0x26   : > { %2758 = vmatmul.mubr.msk.f32.vlgmr.msra.gmra.mrb[0].mxu0 %vm289_vm0, %v273_v25  ;;  %2886 = vmatpush1.bf16.msra.mxu1 %v2885_v24 }
  0x27   : > { %408 = vmatprep.mubr.f32.mxu0 %v4980_v0  ;;  %2890 = vmatpush1.bf16.msra.mxu0 %v2873_v8 }
  0x28   : > { %2892 = vmatprep.subr.bf16.mxu0 %v2875_v9  ;;  %2896 = vmatprep.subr.bf16.mxu1 %v2879_v17 }
  0x29   : > { %2774 = vmatmul.mubr.msk.f32.vlgmr.msra.gmra.mrb[0].mxu1 %vm289_vm0, %v273_v25 }
  0x2a   : > { %2759 = vmatmul.mubr.msk.f32.gmra.mrb[2].mxu0 %vm289_vm0, %v274_v26  ;;  %569 = vmatprep.mubr.f32.mxu1 %v4980_v0 }
  0x2b   : > { %414 = vmatprep.mubr.f32.mxu0 %v4980_v0  ;;  %2894 = vmatpush1.bf16.msra.mxu0 %v2877_v16 }
  0x2c   : > { %2898 = vmatpush1.bf16.msra.mxu1 %v2881_v18 }
  0x2d   : > { %2775 = vmatmul.mubr.msk.f32.gmra.mrb[2].mxu1 %vm289_vm0, %v274_v26  ;;  %2900 = vmatprep.subr.bf16.mxu1 %v2883_v22 }
  0x2e   : > { %2760 = vmatmul.mubr.msk.f32.gmra.mrb[4].mxu0 %vm289_vm0, %v275_v27  ;;  %575 = vmatprep.mubr.f32.mxu1 %v4980_v0 }
  0x2f   : > { %420 = vmatprep.mubr.f32.mxu0 %v4980_v0 }
  0x30   : > { %2902 = vmatpush1.bf16.msra.mxu1 %v2885_v24 }
  0x31   : > { %2776 = vmatmul.mubr.msk.f32.gmra.mrb[4].mxu1 %vm289_vm0, %v275_v27 }
  0x32   : > { %2761 = vmatmul.mubr.msk.f32.gmra.mrb[6].mxu0 %vm289_vm0, %v276_v28  ;;  %581 = vmatprep.mubr.f32.mxu1 %v4980_v0 }
  0x33   : > { %426 = vmatprep.mubr.f32.mxu0 %v4980_v0 }
  0x35   : > { %2777 = vmatmul.mubr.msk.f32.gmra.mrb[6].mxu1 %vm289_vm0, %v276_v28  ;;  %v671_v28 = vld [vmem:[%s4975_s2 + $0x58] sm:$0xff] }
  0x36   : > { %2762 = vmatmul.mubr.msk.f32.gmra.mrb[8].mxu0 %vm289_vm0, %v277_v29  ;;  %587 = vmatprep.mubr.f32.mxu1 %v4980_v0 }
  0x37   : > { %432 = vmatprep.mubr.f32.mxu0 %v4980_v0 }
  0x39   : > { %2778 = vmatmul.mubr.msk.f32.gmra.mrb[8].mxu1 %vm289_vm0, %v277_v29 }
  0x3a   : > { %2763 = vmatmul.mubr.msk.f32.gmra.mrb[10].mxu0 %vm289_vm0, %v278_v30  ;;  %593 = vmatprep.mubr.f32.mxu1 %v4980_v0 }
  0x3b   : > { %438 = vmatprep.mubr.f32.mxu0 %v4980_v0 }
  0x3d   : > { %2779 = vmatmul.mubr.msk.f32.gmra.mrb[10].mxu1 %vm289_vm0, %v278_v30 }
  0x3e   : > { %2764 = vmatmul.mubr.msk.f32.gmra.mrb[12].mxu0 %vm289_vm0, %v279_v31  ;;  %599 = vmatprep.mubr.f32.mxu1 %v4980_v0 }
  0x3f   : > { %444 = vmatprep.mubr.f32.mxu0 %v4980_v0 }
  0x41   : > { %2780 = vmatmul.mubr.msk.f32.gmra.mrb[12].mxu1 %vm289_vm0, %v279_v31 }
  0x42   : > { %2765 = vmatmul.mubr.msk.f32.gmra.mrb[14].mxu0 %vm289_vm0, %v280_v32  ;;  %605 = vmatprep.mubr.f32.mxu1 %v4980_v0 }
  0x43   : > { %450 = vmatprep.mubr.f32.mxu0 %v4980_v0 }
  0x45   : > { %2781 = vmatmul.mubr.msk.f32.gmra.mrb[14].mxu1 %vm289_vm0, %v280_v32 }
  0x46   : > { %2766 = vmatmul.mubr.msk.f32.gmra.mrb[16].mxu0 %vm289_vm0, %v281_v33  ;;  %611 = vmatprep.mubr.f32.mxu1 %v4980_v0 }
  0x47   : > { %456 = vmatprep.mubr.f32.mxu0 %v4980_v0 }
  0x49   : > { %2782 = vmatmul.mubr.msk.f32.gmra.mrb[16].mxu1 %vm289_vm0, %v281_v33 }
  0x4a   : > { %2767 = vmatmul.mubr.msk.f32.gmra.mrb[18].mxu0 %vm289_vm0, %v282_v34  ;;  %617 = vmatprep.mubr.f32.mxu1 %v4980_v0 }
  0x4b   : > { %462 = vmatprep.mubr.f32.mxu0 %v4980_v0 }
  0x4d   : > { %2783 = vmatmul.mubr.msk.f32.gmra.mrb[18].mxu1 %vm289_vm0, %v282_v34 }
  0x4e   : > { %2768 = vmatmul.mubr.msk.f32.gmra.mrb[20].mxu0 %vm289_vm0, %v283_v35  ;;  %623 = vmatprep.mubr.f32.mxu1 %v4980_v0 }
  0x4f   : > { %468 = vmatprep.mubr.f32.mxu0 %v4980_v0 }
  0x51   : > { %2784 = vmatmul.mubr.msk.f32.gmra.mrb[20].mxu1 %vm289_vm0, %v283_v35  ;;  %v672_v35 = vld [vmem:[%s4975_s2 + $0x60] sm:$0xff] }
  0x52   : > { %2769 = vmatmul.mubr.msk.f32.gmra.mrb[22].mxu0 %vm289_vm0, %v284_v36  ;;  %629 = vmatprep.mubr.f32.mxu1 %v4980_v0 }
  0x53   : > { %474 = vmatprep.mubr.f32.mxu0 %v4980_v0 }
  0x55   : > { %2785 = vmatmul.mubr.msk.f32.gmra.mrb[22].mxu1 %vm289_vm0, %v284_v36 }
  0x56   : > { %2770 = vmatmul.mubr.msk.f32.gmra.mrb[24].mxu0 %vm289_vm0, %v285_v37  ;;  %635 = vmatprep.mubr.f32.mxu1 %v4980_v0 }
  0x57   : > { %480 = vmatprep.mubr.f32.mxu0 %v4980_v0 }
  0x59   : > { %2786 = vmatmul.mubr.msk.f32.gmra.mrb[24].mxu1 %vm289_vm0, %v285_v37 }
  0x5a   : > { %2771 = vmatmul.mubr.msk.f32.gmra.mrb[26].mxu0 %vm289_vm0, %v286_v38  ;;  %641 = vmatprep.mubr.f32.mxu1 %v4980_v0 }
  0x5b   : > { %486 = vmatprep.mubr.f32.mxu0 %v4980_v0 }
  0x5d   : > { %2787 = vmatmul.mubr.msk.f32.gmra.mrb[26].mxu1 %vm289_vm0, %v286_v38 }
  0x5e   : > { %2772 = vmatmul.mubr.msk.f32.gmra.mrb[28].mxu0 %vm289_vm0, %v287_v39  ;;  %647 = vmatprep.mubr.f32.mxu1 %v4980_v0 }
  0x5f   : > { %492 = vmatprep.mubr.f32.mxu0 %v4980_v0 }
  0x61   : > { %2788 = vmatmul.mubr.msk.f32.gmra.mrb[28].mxu1 %vm289_vm0, %v287_v39 }
  0x62   : > { %2773 = vmatmul.mubr.msk.f32.gmra.mrb[30].mxu0 %vm289_vm0, %v288_v40  ;;  %653 = vmatprep.mubr.f32.mxu1 %v4980_v0 }
  0x63   : > { %852 = vmatprep.mubr.f32.mxu0 %v4980_v0 }
  0x65   : > { %2789 = vmatmul.mubr.msk.f32.gmra.mrb[30].mxu1 %vm289_vm0, %v288_v40 }
  0x66   : > { %1109 = vmatprep.mubr.f32.mxu1 %v4980_v0  ;;  %2790 = vmatmul.mubr.msk.f32.vlgmr.msra.gmra.mrb[32].mxu0 %vm289_vm0, %v660_v41 }
  0x67   : > { %858 = vmatprep.mubr.f32.mxu0 %v4980_v0 }
  0x69   : > { %2822 = vmatmul.mubr.msk.f32.vlgmr.msra.gmra.mrb[32].mxu1 %vm289_vm0, %v660_v41 }
  0x6a   : > { %1115 = vmatprep.mubr.f32.mxu1 %v4980_v0  ;;  %2791 = vmatmul.mubr.msk.f32.gmra.mrb[34].mxu0 %vm289_vm0, %v661_v42 }
  0x6b   : > { %864 = vmatprep.mubr.f32.mxu0 %v4980_v0 }
  0x6d   : > { %2823 = vmatmul.mubr.msk.f32.gmra.mrb[34].mxu1 %vm289_vm0, %v661_v42  ;;  %v673_v42 = vld [vmem:[%s4975_s2 + $0x68] sm:$0xff] }
  0x6e   : > { %1121 = vmatprep.mubr.f32.mxu1 %v4980_v0  ;;  %2792 = vmatmul.mubr.msk.f32.gmra.mrb[36].mxu0 %vm289_vm0, %v662_v43 }
  0x6f   : > { %870 = vmatprep.mubr.f32.mxu0 %v4980_v0 }
  0x71   : > { %2824 = vmatmul.mubr.msk.f32.gmra.mrb[36].mxu1 %vm289_vm0, %v662_v43 }
  0x72   : > { %1127 = vmatprep.mubr.f32.mxu1 %v4980_v0  ;;  %2793 = vmatmul.mubr.msk.f32.gmra.mrb[38].mxu0 %vm289_vm0, %v663_v44 }
  0x73   : > { %876 = vmatprep.mubr.f32.mxu0 %v4980_v0 }
  0x75   : > { %2825 = vmatmul.mubr.msk.f32.gmra.mrb[38].mxu1 %vm289_vm0, %v663_v44 }
  0x76   : > { %1133 = vmatprep.mubr.f32.mxu1 %v4980_v0  ;;  %2794 = vmatmul.mubr.msk.f32.gmra.mrb[40].mxu0 %vm289_vm0, %v664_v45 }
  0x77   : > { %882 = vmatprep.mubr.f32.mxu0 %v4980_v0 }
  0x79   : > { %2826 = vmatmul.mubr.msk.f32.gmra.mrb[40].mxu1 %vm289_vm0, %v664_v45 }
  0x7a   : > { %1139 = vmatprep.mubr.f32.mxu1 %v4980_v0  ;;  %2795 = vmatmul.mubr.msk.f32.gmra.mrb[42].mxu0 %vm289_vm0, %v665_v46 }
  0x7b   : > { %888 = vmatprep.mubr.f32.mxu0 %v4980_v0 }
  0x7d   : > { %2827 = vmatmul.mubr.msk.f32.gmra.mrb[42].mxu1 %vm289_vm0, %v665_v46 }
  0x7e   : > { %1145 = vmatprep.mubr.f32.mxu1 %v4980_v0  ;;  %2796 = vmatmul.mubr.msk.f32.gmra.mrb[44].mxu0 %vm289_vm0, %v666_v47 }
  0x7f   : > { %894 = vmatprep.mubr.f32.mxu0 %v4980_v0 }
  0x81   : > { %2828 = vmatmul.mubr.msk.f32.gmra.mrb[44].mxu1 %vm289_vm0, %v666_v47 }
  0x82   : > { %1151 = vmatprep.mubr.f32.mxu1 %v4980_v0  ;;  %2797 = vmatmul.mubr.msk.f32.gmra.mrb[46].mxu0 %vm289_vm0, %v667_v48 }
  0x83   : > { %900 = vmatprep.mubr.f32.mxu0 %v4980_v0 }
  0x85   : > { %2829 = vmatmul.mubr.msk.f32.gmra.mrb[46].mxu1 %vm289_vm0, %v667_v48 }
  0x86   : > { %1157 = vmatprep.mubr.f32.mxu1 %v4980_v0  ;;  %2798 = vmatmul.mubr.msk.f32.gmra.mrb[48].mxu0 %vm289_vm0, %v668_v49 }
  0x87   : > { %906 = vmatprep.mubr.f32.mxu0 %v4980_v0 }
  0x89   : > { %2830 = vmatmul.mubr.msk.f32.gmra.mrb[48].mxu1 %vm289_vm0, %v668_v49  ;;  %v674_v49 = vld [vmem:[%s4975_s2 + $0x70] sm:$0xff] }
  0x8a   : > { %1163 = vmatprep.mubr.f32.mxu1 %v4980_v0  ;;  %2799 = vmatmul.mubr.msk.f32.gmra.mrb[50].mxu0 %vm289_vm0, %v669_v14 }
  0x8b   : > { %912 = vmatprep.mubr.f32.mxu0 %v4980_v0 }
  0x8d   : > { %2831 = vmatmul.mubr.msk.f32.gmra.mrb[50].mxu1 %vm289_vm0, %v669_v14 }
  0x8e   : > { %1169 = vmatprep.mubr.f32.mxu1 %v4980_v0  ;;  %2800 = vmatmul.mubr.msk.f32.gmra.mrb[52].mxu0 %vm289_vm0, %v670_v21 }
  0x8f   : > { %918 = vmatprep.mubr.f32.mxu0 %v4980_v0 }
  0x91   : > { %2832 = vmatmul.mubr.msk.f32.gmra.mrb[52].mxu1 %vm289_vm0, %v670_v21 }
  0x92   : > { %1175 = vmatprep.mubr.f32.mxu1 %v4980_v0  ;;  %2801 = vmatmul.mubr.msk.f32.gmra.mrb[54].mxu0 %vm289_vm0, %v671_v28 }
  0x93   : > { %924 = vmatprep.mubr.f32.mxu0 %v4980_v0 }
  0x95   : > { %2833 = vmatmul.mubr.msk.f32.gmra.mrb[54].mxu1 %vm289_vm0, %v671_v28 }
  0x96   : > { %1181 = vmatprep.mubr.f32.mxu1 %v4980_v0  ;;  %2802 = vmatmul.mubr.msk.f32.gmra.mrb[56].mxu0 %vm289_vm0, %v672_v35 }
  0x97   : > { %930 = vmatprep.mubr.f32.mxu0 %v4980_v0 }
  0x99   : > { %2834 = vmatmul.mubr.msk.f32.gmra.mrb[56].mxu1 %vm289_vm0, %v672_v35 }
  0x9a   : > { %1187 = vmatprep.mubr.f32.mxu1 %v4980_v0  ;;  %2803 = vmatmul.mubr.msk.f32.gmra.mrb[58].mxu0 %vm289_vm0, %v673_v42 }
  0x9b   : > { %936 = vmatprep.mubr.f32.mxu0 %v4980_v0 }
  0x9d   : > { %2835 = vmatmul.mubr.msk.f32.gmra.mrb[58].mxu1 %vm289_vm0, %v673_v42  ;;  %v676_v42 = vld [vmem:[%s4975_s2 + $0x80] sm:$0xff] }
  0x9e   : > { %1193 = vmatprep.mubr.f32.mxu1 %v4980_v0  ;;  %2804 = vmatmul.mubr.msk.f32.gmra.mrb[60].mxu0 %vm289_vm0, %v674_v49 }
  0x9f   : > { %942 = vmatprep.mubr.f32.mxu0 %v4980_v0 }
  0xa1   : > { %2836 = vmatmul.mubr.msk.f32.gmra.mrb[60].mxu1 %vm289_vm0, %v674_v49 }
  0xa2   : > { %1199 = vmatprep.mubr.f32.mxu1 %v4980_v0 }
  0xf9   : > { %v3665_v50 = vpop.f32.mrb[0].mxu0 }
  0xfa   : > { %v3667_v51 = vpop.f32.mrb[1].mxu0 }
  0xfb   : > { %v1318_v52 = vmax.f32 %v3665_v50, %v3667_v51 }
  0xfc   : > { %v3671_v53 = vpop.f32.mrb[0].mxu1 }
  0xfd   : > { %1319 = vmax.xlane.f32.xlu0 %v1318_v52  ;;  %v3673_v54 = vpop.f32.mrb[2].mxu0  ;;  %v3675_v55 = vpop.f32.mrb[1].mxu1 }
  0xfe   : > { %v3677_v56 = vpop.f32.mrb[3].mxu0  ;;  %v5057_v19 = vmax.f32 %v3671_v53, %v3675_v55 }
  0xff   : > { %v1321_v58 = vmax.f32 %v3673_v54, %v3677_v56 }
 0x100   : > { %v3683_v59 = vpop.f32.mrb[2].mxu1 }
 0x101   : > { %1322 = vmax.xlane.f32.xlu0 %v1321_v58  ;;  %v3685_v60 = vpop.f32.mrb[4].mxu0  ;;  %v3687_v61 = vpop.f32.mrb[3].mxu1 }
 0x102   : > { %v3689_v62 = vpop.f32.mrb[5].mxu0 }
 0x103   : > { %v1324_v1 = vmax.f32 %v3685_v60, %v3689_v62 }
 0x104   : > { %v3695_v2 = vpop.f32.mrb[4].mxu1 }
 0x105   : > { %1325 = vmax.xlane.f32.xlu1 %v1324_v1  ;;  %v3697_v3 = vpop.f32.mrb[6].mxu0  ;;  %v3699_v4 = vpop.f32.mrb[5].mxu1 }
 0x106   : > { %v3701_v5 = vpop.f32.mrb[7].mxu0 }
 0x107   : > { %v1327_v7 = vmax.f32 %v3697_v3, %v3701_v5 }
 0x108   : > { %v3707_v8 = vpop.f32.mrb[6].mxu1 }
 0x109   : > { %1328 = vmax.xlane.f32.xlu1 %v1327_v7  ;;  %v3709_v9 = vpop.f32.mrb[8].mxu0  ;;  %v3711_v10 = vpop.f32.mrb[7].mxu1 }
 0x10a   : > { %v3713_v11 = vpop.f32.mrb[9].mxu0 }
 0x10b   : > { %v1330_v13 = vmax.f32 %v3709_v9, %v3713_v11 }
 0x10c   : > { %v3722_v15 = vpop.f32.mrb[8].mxu1 }
 0x10d   : > { %1331 = vmax.xlane.f32.xlu0 %v1330_v13  ;;  %v3726_v16 = vpop.f32.mrb[10].mxu0  ;;  %v3728_v17 = vpop.f32.mrb[9].mxu1 }
 0x10e   : > { %v3731_v18 = vpop.f32.mrb[11].mxu0 }
 0x10f   : > { %v1333_v20 = vmax.f32 %v3726_v16, %v3731_v18 }
 0x110   : > { %v3741_v22 = vpop.f32.mrb[10].mxu1 }
 0x111   : > { %1334 = vmax.xlane.f32.xlu1 %v1333_v20  ;;  %v3745_v23 = vpop.f32.mrb[12].mxu0  ;;  %v3747_v24 = vpop.f32.mrb[11].mxu1  ;;  %v675_v20 = vld [vmem:[%s4975_s2 + $0x78] sm:$0xff] }
 0x112   : > { %5048 = vst [vmem:[#allocation5_spill] sm:$0xff] %v3747_v24  ;;  %v3750_v25 = vpop.f32.mrb[13].mxu0  ;;  %2805 = vmatmul.mubr.msk.f32.gmra.mrb[62].mxu0 %vm289_vm0, %v675_v20  ;;  %2837 = vmatmul.mubr.msk.f32.gmra.mrb[62].mxu1 %vm289_vm0, %v675_v20 }
 0x113   : > { %v1336_v27 = vmax.f32 %v3745_v23, %v3750_v25  ;;  %948 = vmatprep.mubr.f32.mxu0 %v4980_v0  ;;  %1205 = vmatprep.mubr.f32.mxu1 %v4980_v0 }
 0x114   : > { %v3760_v29 = vpop.f32.mrb[12].mxu1 }
 0x115   : > { %1337 = vmax.xlane.f32.xlu0 %v1336_v27  ;;  %v3764_v30 = vpop.f32.mrb[14].mxu0  ;;  %v3766_v31 = vpop.f32.mrb[13].mxu1 }
 0x116   : > { %v3769_v32 = vpop.f32.mrb[15].mxu0  ;;  %2806 = vmatmul.mubr.msk.f32.gmra.mrb[64].mxu0 %vm289_vm0, %v676_v42  ;;  %2838 = vmatmul.mubr.msk.f32.gmra.mrb[64].mxu1 %vm289_vm0, %v676_v42 }
 0x117   : > { %v1339_v34 = vmax.f32 %v3764_v30, %v3769_v32  ;;  %954 = vmatprep.mubr.f32.mxu0 %v4980_v0  ;;  %1211 = vmatprep.mubr.f32.mxu1 %v4980_v0 }
 0x118   : > { %v3779_v36 = vpop.f32.mrb[14].mxu1 }
 0x119   : > { %5049 = vst [vmem:[#allocation6_spill] sm:$0xff] %v3779_v36  ;;  %1340 = vmax.xlane.f32.xlu1 %v1339_v34  ;;  %v3783_v37 = vpop.f32.mrb[16].mxu0  ;;  %v3785_v38 = vpop.f32.mrb[15].mxu1 }
 0x11a   : > { %5050 = vst [vmem:[#allocation7_spill] sm:$0xff] %v3785_v38  ;;  %v3788_v39 = vpop.f32.mrb[17].mxu0 }
 0x11b   : > { %v1342_v41 = vmax.f32 %v3783_v37, %v3788_v39 }
 0x11c   : > { %v3798_v43 = vpop.f32.mrb[16].mxu1 }
 0x11d   : > { %1343 = vmax.xlane.f32.xlu0 %v1342_v41  ;;  %v3802_v44 = vpop.f32.mrb[18].mxu0  ;;  %v3804_v45 = vpop.f32.mrb[17].mxu1 }
 0x11e   : > { %v3807_v46 = vpop.f32.mrb[19].mxu0 }
 0x11f   : > { %v1345_v48 = vmax.f32 %v3802_v44, %v3807_v46 }
 0x120   : > { %v3817_v52 = vpop.f32.mrb[18].mxu1 }
 0x121   : > { %1346 = vmax.xlane.f32.xlu1 %v1345_v48  ;;  %v3821_v58 = vpop.f32.mrb[20].mxu0  ;;  %v3823_v1 = vpop.f32.mrb[19].mxu1 }
 0x122   : > { %v3826_v7 = vpop.f32.mrb[21].mxu0 }
 0x123   : > { %v1348_v14 = vmax.f32 %v3821_v58, %v3826_v7 }
 0x124   : > { %v3836_v21 = vpop.f32.mrb[20].mxu1 }
 0x125   : > { %1349 = vmax.xlane.f32.xlu0 %v1348_v14  ;;  %v3840_v27 = vpop.f32.mrb[22].mxu0  ;;  %v3842_v28 = vpop.f32.mrb[21].mxu1 }
 0x126   : > { %v3845_v34 = vpop.f32.mrb[23].mxu0 }
 0x127   : > { %v1351_v41 = vmax.f32 %v3840_v27, %v3845_v34 }
 0x128   : > { %v3855_v48 = vpop.f32.mrb[22].mxu1 }
 0x129   : > { %1352 = vmax.xlane.f32.xlu1 %v1351_v41  ;;  %v3859_v49 = vpop.f32.mrb[24].mxu0  ;;  %v3861_v14 = vpop.f32.mrb[23].mxu1 }
 0x12a   : > { %v3864_v20 = vpop.f32.mrb[25].mxu0 }
 0x12b   : > { %5051 = vst [vmem:[#allocation8_spill] sm:$0xff] %v3864_v20  ;;  %v1354_v13 = vmax.f32 %v3859_v49, %v3864_v20 }
 0x12c   : > { %v3871_v47 = vpop.f32.mrb[24].mxu1 }
 0x12d   : > { %1355 = vmax.xlane.f32.xlu0 %v1354_v13  ;;  %v3873_v41 = vpop.f32.mrb[26].mxu0  ;;  %v3875_v42 = vpop.f32.mrb[25].mxu1 }
 0x12e   : > { %5052 = vst [vmem:[#allocation9_spill] sm:$0xff] %v3873_v41  ;;  %v3877_v40 = vpop.f32.mrb[27].mxu0 }
 0x12f   : > { %5053 = vst [vmem:[#allocation10_spill] sm:$0xff] %v3877_v40  ;;  %v1357_v35 = vmax.f32 %v3873_v41, %v3877_v40  ;;  %v5059_v40 = vmax.f32 %v3683_v59, %v3687_v61 }
 0x130   : > { %v3883_v33 = vpop.f32.mrb[26].mxu1 }
 0x131   : > { %1358 = vmax.xlane.f32.xlu1 %v1357_v35  ;;  %v3885_v0 = vpop.f32.mrb[28].mxu0  ;;  %v3887_v12 = vpop.f32.mrb[27].mxu1 }
 0x132   : > { %5054 = vst [vmem:[#allocation11_spill] sm:$0xff] %v3885_v0  ;;  %v3889_v13 = vpop.f32.mrb[29].mxu0 }
 0x133   : > { %5055 = vst [vmem:[#allocation12_spill] sm:$0xff] %v3889_v13  ;;  %v1360_v63 = vmax.f32 %v3885_v0, %v3889_v13  ;;  %v5058_v0 = vmax.f32 %v3695_v2, %v3699_v4  ;;  %v5063_v13 = vmax.f32 %v3741_v22, %v3747_v24 }
 0x134   : > { %v3895_v6 = vpop.f32.mrb[28].mxu1 }
 0x135   : > { %1361 = vmax.xlane.f32.xlu0 %v1360_v63  ;;  %v3897_v26 = vpop.f32.mrb[30].mxu0  ;;  %v3899_v57 = vpop.f32.mrb[29].mxu1 }
 0x136   : > { %v3901_v35 = vpop.f32.mrb[31].mxu0 }
 0x137   : > { %5056 = vst [vmem:[#allocation13_spill] sm:$0xff] %v3901_v35  ;;  %v1363_v41 = vmax.f32 %v3897_v26, %v3901_v35  ;;  %v5060_v35 = vmax.f32 %v3722_v15, %v3728_v17 }
 0x138   : > { %v3907_v20 = vpop.f32.mrb[30].mxu1 }
 0x139   : > { %1881 = vmax.xlane.f32.xlu0 %v5057_v19  ;;  %1364 = vmax.xlane.f32.xlu1 %v1363_v41  ;;  %v3912_v63 = vpop.f32.mrb[31].mxu1  ;;  %v5061_v19 = vmax.f32 %v3707_v8, %v3711_v10  ;;  %v5062_v41 = vmax.f32 %v3760_v29, %v3766_v31 }
 0x13d   : > { %1887 = vmax.xlane.f32.xlu0 %v5058_v0  ;;  %1884 = vmax.xlane.f32.xlu1 %v5059_v40  ;;  %v5064_v0 = vmax.f32 %v3779_v36, %v3785_v38  ;;  %v677_v40 = vld [vmem:[%s4975_s2 + $0x88] sm:$0xff] }
 0x13e   : > { %2807 = vmatmul.mubr.msk.f32.gmra.mrb[66].mxu0 %vm289_vm0, %v677_v40  ;;  %2839 = vmatmul.mubr.msk.f32.gmra.mrb[66].mxu1 %vm289_vm0, %v677_v40  ;;  %v682_v40 = vld [vmem:[%s4975_s2 + $0xb0] sm:$0xff] }
 0x141   : > { %1893 = vmax.xlane.f32.xlu0 %v5060_v35  ;;  %1890 = vmax.xlane.f32.xlu1 %v5061_v19  ;;  %v5065_v35 = vmov 0.0   ;;  %v679_v19 = vld [vmem:[%s4975_s2 + $0x98] sm:$0xff] }
 0x142   : > { %960 = vmatprep.mubr.f32.mxu0 %v5065_v35  ;;  %1217 = vmatprep.mubr.f32.mxu1 %v5065_v35 }
 0x145   : > { %1899 = vmax.xlane.f32.xlu0 %v5062_v41  ;;  %1896 = vmax.xlane.f32.xlu1 %v5063_v13  ;;  %v678_v13 = vld [vmem:[%s4975_s2 + $0x90] sm:$0xff]  ;;  %v680_v41 = vld [vmem:[%s4975_s2 + $0xa0] sm:$0xff] }
 0x146   : > { %2808 = vmatmul.mubr.msk.f32.gmra.mrb[68].mxu0 %vm289_vm0, %v678_v13  ;;  %2840 = vmatmul.mubr.msk.f32.gmra.mrb[68].mxu1 %vm289_vm0, %v678_v13  ;;  %v683_v13 = vld [vmem:[%s4975_s2 + $0xb8] sm:$0xff] }
 0x147   : > { %966 = vmatprep.mubr.f32.mxu0 %v5065_v35  ;;  %1223 = vmatprep.mubr.f32.mxu1 %v5065_v35 }
 0x149   : > { %1902 = vmax.xlane.f32.xlu1 %v5064_v0  ;;  %v681_v0 = vld [vmem:[%s4975_s2 + $0xa8] sm:$0xff] }
 0x14a   : > { %2809 = vmatmul.mubr.msk.f32.gmra.mrb[70].mxu0 %vm289_vm0, %v679_v19  ;;  %2841 = vmatmul.mubr.msk.f32.gmra.mrb[70].mxu1 %vm289_vm0, %v679_v19  ;;  %v684_v19 = vld [vmem:[%s4975_s2 + $0xc0] sm:$0xff] }
 0x14b   : > { %972 = vmatprep.mubr.f32.mxu0 %v5065_v35  ;;  %1229 = vmatprep.mubr.f32.mxu1 %v5065_v35 }
 0x14e   : > { %2810 = vmatmul.mubr.msk.f32.gmra.mrb[72].mxu0 %vm289_vm0, %v680_v41  ;;  %2842 = vmatmul.mubr.msk.f32.gmra.mrb[72].mxu1 %vm289_vm0, %v680_v41  ;;  %v685_v41 = vld [vmem:[%s4975_s2 + $0xc8] sm:$0xff] }
 0x14f   : > { %978 = vmatprep.mubr.f32.mxu0 %v5065_v35  ;;  %1235 = vmatprep.mubr.f32.mxu1 %v5065_v35 }
 0x152   : > { %2811 = vmatmul.mubr.msk.f32.gmra.mrb[74].mxu0 %vm289_vm0, %v681_v0  ;;  %2843 = vmatmul.mubr.msk.f32.gmra.mrb[74].mxu1 %vm289_vm0, %v681_v0  ;;  %v686_v0 = vld [vmem:[%s4975_s2 + $0xd0] sm:$0xff] }
 0x153   : > { %984 = vmatprep.mubr.f32.mxu0 %v5065_v35  ;;  %1241 = vmatprep.mubr.f32.mxu1 %v5065_v35 }
 0x156   : > { %2812 = vmatmul.mubr.msk.f32.gmra.mrb[76].mxu0 %vm289_vm0, %v682_v40  ;;  %2844 = vmatmul.mubr.msk.f32.gmra.mrb[76].mxu1 %vm289_vm0, %v682_v40 }
 0x157   : > { %990 = vmatprep.mubr.f32.mxu0 %v5065_v35  ;;  %1247 = vmatprep.mubr.f32.mxu1 %v5065_v35 }
 0x15a   : > { %2813 = vmatmul.mubr.msk.f32.gmra.mrb[78].mxu0 %vm289_vm0, %v683_v13  ;;  %2845 = vmatmul.mubr.msk.f32.gmra.mrb[78].mxu1 %vm289_vm0, %v683_v13 }
 0x15b   : > { %996 = vmatprep.mubr.f32.mxu0 %v5065_v35  ;;  %1253 = vmatprep.mubr.f32.mxu1 %v5065_v35 }
 0x15e   : > { %2814 = vmatmul.mubr.msk.f32.gmra.mrb[80].mxu0 %vm289_vm0, %v684_v19  ;;  %2846 = vmatmul.mubr.msk.f32.gmra.mrb[80].mxu1 %vm289_vm0, %v684_v19 }
 0x15f   : > { %1002 = vmatprep.mubr.f32.mxu0 %v5065_v35  ;;  %1259 = vmatprep.mubr.f32.mxu1 %v5065_v35 }
 0x162   : > { %2815 = vmatmul.mubr.msk.f32.gmra.mrb[82].mxu0 %vm289_vm0, %v685_v41  ;;  %2847 = vmatmul.mubr.msk.f32.gmra.mrb[82].mxu1 %vm289_vm0, %v685_v41  ;;  %v687_v41 = vld [vmem:[%s4975_s2 + $0xd8] sm:$0xff] }
 0x163   : > { %1008 = vmatprep.mubr.f32.mxu0 %v5065_v35  ;;  %1265 = vmatprep.mubr.f32.mxu1 %v5065_v35 }
 0x166   : > { %2816 = vmatmul.mubr.msk.f32.gmra.mrb[84].mxu0 %vm289_vm0, %v686_v0  ;;  %2848 = vmatmul.mubr.msk.f32.gmra.mrb[84].mxu1 %vm289_vm0, %v686_v0 }
 0x167   : > { %1014 = vmatprep.mubr.f32.mxu0 %v5065_v35  ;;  %1271 = vmatprep.mubr.f32.mxu1 %v5065_v35 }
 0x16a   : > { %2817 = vmatmul.mubr.msk.f32.gmra.mrb[86].mxu0 %vm289_vm0, %v687_v41  ;;  %2849 = vmatmul.mubr.msk.f32.gmra.mrb[86].mxu1 %vm289_vm0, %v687_v41 }
 0x16b   : > { %1020 = vmatprep.mubr.f32.mxu0 %v5065_v35  ;;  %1277 = vmatprep.mubr.f32.mxu1 %v5065_v35 }
 0x18a   : > { %v1320_v40 = vpop.xlane.xlu0 %1319 }
 0x18b   : > { %v1366_v13 = vsub.f32 %v3665_v50, %v1320_v40  ;;  %v1367_v19 = vsub.f32 %v3667_v51, %v1320_v40 }
 0x18d   : > { %v1398_v38 = vmul.f32 1.442695, %v1366_v13  ;;  %v1400_v36 = vmul.f32 1.442695, %v1367_v19  ;;  %v688_v13 = vld [vmem:[%s4975_s2 + $0xe0] sm:$0xff]  ;;  %v689_v19 = vld [vmem:[%s4975_s2 + $0xe8] sm:$0xff] }
 0x18e   : > { %v1323_v24 = vpop.xlane.xlu0 %1322  ;;  %2818 = vmatmul.mubr.msk.f32.gmra.mrb[88].mxu0 %vm289_vm0, %v688_v13  ;;  %2850 = vmatmul.mubr.msk.f32.gmra.mrb[88].mxu1 %vm289_vm0, %v688_v13 }
 0x18f   : > { %3140 = vpow2.f32 %v1398_v38  ;;  %v1368_v50 = vsub.f32 %v3673_v54, %v1323_v24  ;;  %v1369_v51 = vsub.f32 %v3677_v56, %v1323_v24  ;;  %1026 = vmatprep.mubr.f32.mxu0 %v5065_v35  ;;  %1283 = vmatprep.mubr.f32.mxu1 %v5065_v35 }
 0x190   : > { %3142 = vpow2.f32 %v1400_v36 }
 0x191   : > { %v1402_v0 = vmul.f32 1.442695, %v1368_v50  ;;  %v1404_v40 = vmul.f32 1.442695, %v1369_v51 }
 0x192   : > { %v1326_v38 = vpop.xlane.xlu1 %1325  ;;  %2819 = vmatmul.mubr.msk.f32.gmra.mrb[90].mxu0 %vm289_vm0, %v689_v19  ;;  %2851 = vmatmul.mubr.msk.f32.gmra.mrb[90].mxu1 %vm289_vm0, %v689_v19 }
 0x193   : > { %3144 = vpow2.f32 %v1402_v0  ;;  %v1370_v54 = vsub.f32 %v3685_v60, %v1326_v38  ;;  %v1371_v56 = vsub.f32 %v3689_v62, %v1326_v38  ;;  %1032 = vmatprep.mubr.f32.mxu0 %v5065_v35  ;;  %1289 = vmatprep.mubr.f32.mxu1 %v5065_v35 }
 0x194   : > { %3146 = vpow2.f32 %v1404_v40  ;;  %v690_v40 = vld [vmem:[%s4975_s2 + $0xf0] sm:$0xff] }
 0x195   : > { %v1406_v24 = vmul.f32 1.442695, %v1370_v54  ;;  %v1408_v36 = vmul.f32 1.442695, %v1371_v56 }
 0x196   : > { %v1329_v41 = vpop.xlane.xlu1 %1328  ;;  %2820 = vmatmul.mubr.msk.f32.gmra.mrb[92].mxu0 %vm289_vm0, %v690_v40  ;;  %2852 = vmatmul.mubr.msk.f32.gmra.mrb[92].mxu1 %vm289_vm0, %v690_v40 }
 0x197   : > { %3148 = vpow2.f32 %v1406_v24  ;;  %v1372_v60 = vsub.f32 %v3697_v3, %v1329_v41  ;;  %v1373_v62 = vsub.f32 %v3701_v5, %v1329_v41  ;;  %1038 = vmatprep.mubr.f32.mxu0 %v5065_v35  ;;  %1295 = vmatprep.mubr.f32.mxu1 %v5065_v35 }
 0x198   : > { %3150 = vpow2.f32 %v1408_v36 }
 0x199   : > { %v4034_v50 = vpop.eup %3140  ;;  %v1410_v51 = vmul.f32 1.442695, %v1372_v60  ;;  %v1412_v0 = vmul.f32 1.442695, %v1373_v62 }
 0x19a   : > { %v4041_v3 = vpop.eup %3142  ;;  %v1332_v5 = vpop.xlane.xlu0 %1331 }
 0x19b   : > { %3152 = vpow2.f32 %v1410_v51  ;;  %v1374_v13 = vsub.f32 %v3709_v9, %v1332_v5  ;;  %v1375_v38 = vsub.f32 %v3713_v11, %v1332_v5  ;;  %v1462_v54 = vadd.f32 %v4041_v3, %v4034_v50  ;;  %v691_v9 = vld [vmem:[%s4975_s2 + $0xf8] sm:$0xff] }
 0x19c   : > { %3154 = vpow2.f32 %v1412_v0  ;;  %2821 = vmatmul.mubr.msk.f32.gmra.mrb[94].mxu0 %vm289_vm0, %v691_v9  ;;  %2853 = vmatmul.mubr.msk.f32.gmra.mrb[94].mxu1 %vm289_vm0, %v691_v9  ;;  %v5066_v5 = vmax.f32 %v3798_v43, %v3804_v45 }
 0x19d   : > { %v4049_v56 = vpop.eup %3144  ;;  %v1414_v24 = vmul.f32 1.442695, %v1374_v13  ;;  %v1416_v36 = vmul.f32 1.442695, %v1375_v38  ;;  %1463 = vadd.xlane.f32.xlu0 %v1462_v54  ;;  %1783 = vmatprep.mubr.f32.mxu1 %v5065_v35  ;;  %v5083_v35 = vld [vmem:[#allocation11_spill] sm:$0xff] }
 0x19e   : > { %v4055_v11 = vpop.eup %3146  ;;  %v1335_v19 = vpop.xlane.xlu1 %1334 }
 0x19f   : > { %3156 = vpow2.f32 %v1414_v24  ;;  %v1376_v41 = vsub.f32 %v3726_v16, %v1335_v19  ;;  %v1377_v60 = vsub.f32 %v3731_v18, %v1335_v19  ;;  %v1465_v62 = vadd.f32 %v4055_v11, %v4049_v56 }
 0x1a0   : > { %3158 = vpow2.f32 %v1416_v36  ;;  %v5067_v19 = vmax.f32 %v3817_v52, %v3823_v1 }
 0x1a1   : > { %v4064_v51 = vpop.eup %3148  ;;  %v1418_v0 = vmul.f32 1.442695, %v1376_v41  ;;  %v1420_v40 = vmul.f32 1.442695, %v1377_v60  ;;  %1905 = vmax.xlane.f32.xlu0 %v5066_v5  ;;  %1466 = vadd.xlane.f32.xlu1 %v1465_v62 }
 0x1a2   : > { %v4069_v16 = vpop.eup %3150  ;;  %v1338_v18 = vpop.xlane.xlu0 %1337 }
 0x1a3   : > { %3160 = vpow2.f32 %v1418_v0  ;;  %v1378_v13 = vsub.f32 %v3745_v23, %v1338_v18  ;;  %v1379_v38 = vsub.f32 %v3750_v25, %v1338_v18  ;;  %v1468_v54 = vadd.f32 %v4069_v16, %v4064_v51 }
 0x1a4   : > { %3162 = vpow2.f32 %v1420_v40  ;;  %v5068_v18 = vmax.f32 %v3836_v21, %v3842_v28 }
 0x1a5   : > { %v4076_v24 = vpop.eup %3152  ;;  %v1422_v36 = vmul.f32 1.442695, %v1378_v13  ;;  %v1424_v9 = vmul.f32 1.442695, %v1379_v38  ;;  %1469 = vadd.xlane.f32.xlu0 %v1468_v54  ;;  %1908 = vmax.xlane.f32.xlu1 %v5067_v19 }
 0x1a6   : > { %v4081_v41 = vpop.eup %3154  ;;  %v1341_v60 = vpop.xlane.xlu1 %1340 }
 0x1a7   : > { %3164 = vpow2.f32 %v1422_v36  ;;  %v1380_v23 = vsub.f32 %v3764_v30, %v1341_v60  ;;  %v1381_v25 = vsub.f32 %v3769_v32, %v1341_v60  ;;  %v1471_v62 = vadd.f32 %v4081_v41, %v4076_v24 }
 0x1a8   : > { %3166 = vpow2.f32 %v1424_v9  ;;  %v5069_v60 = vmax.f32 %v3855_v48, %v3861_v14 }
 0x1a9   : > { %v4087_v0 = vpop.eup %3156  ;;  %v1426_v40 = vmul.f32 1.442695, %v1380_v23  ;;  %v1428_v5 = vmul.f32 1.442695, %v1381_v25  ;;  %1911 = vmax.xlane.f32.xlu0 %v5068_v18  ;;  %1472 = vadd.xlane.f32.xlu1 %v1471_v62 }
 0x1aa   : > { %v4092_v13 = vpop.eup %3158  ;;  %v1344_v38 = vpop.xlane.xlu0 %1343 }
 0x1ab   : > { %3168 = vpow2.f32 %v1426_v40  ;;  %v1382_v30 = vsub.f32 %v3783_v37, %v1344_v38  ;;  %v1383_v32 = vsub.f32 %v3788_v39, %v1344_v38  ;;  %v1474_v54 = vadd.f32 %v4092_v13, %v4087_v0 }
 0x1ac   : > { %3170 = vpow2.f32 %v1428_v5  ;;  %v5070_v38 = vmax.f32 %v3871_v47, %v3875_v42 }
 0x1ad   : > { %v4098_v36 = vpop.eup %3160  ;;  %v1430_v9 = vmul.f32 1.442695, %v1382_v30  ;;  %v1432_v19 = vmul.f32 1.442695, %v1383_v32  ;;  %1475 = vadd.xlane.f32.xlu0 %v1474_v54  ;;  %1914 = vmax.xlane.f32.xlu1 %v5069_v60 }
 0x1ae   : > { %v4103_v23 = vpop.eup %3162  ;;  %v1347_v25 = vpop.xlane.xlu1 %1346 }
 0x1af   : > { %3172 = vpow2.f32 %v1430_v9  ;;  %v1384_v37 = vsub.f32 %v3802_v44, %v1347_v25  ;;  %v1385_v39 = vsub.f32 %v3807_v46, %v1347_v25  ;;  %v1477_v62 = vadd.f32 %v4103_v23, %v4098_v36 }
 0x1b0   : > { %3174 = vpow2.f32 %v1432_v19  ;;  %v5071_v25 = vmax.f32 %v3883_v33, %v3887_v12 }
 0x1b1   : > { %v4109_v40 = vpop.eup %3164  ;;  %v1434_v5 = vmul.f32 1.442695, %v1384_v37  ;;  %v1436_v18 = vmul.f32 1.442695, %v1385_v39  ;;  %1917 = vmax.xlane.f32.xlu0 %v5070_v38  ;;  %1478 = vadd.xlane.f32.xlu1 %v1477_v62 }
 0x1b2   : > { %v4114_v30 = vpop.eup %3166  ;;  %v1350_v32 = vpop.xlane.xlu0 %1349 }
 0x1b3   : > { %3176 = vpow2.f32 %v1434_v5  ;;  %v1386_v44 = vsub.f32 %v3821_v58, %v1350_v32  ;;  %v1387_v46 = vsub.f32 %v3826_v7, %v1350_v32  ;;  %v1480_v54 = vadd.f32 %v4114_v30, %v4109_v40 }
 0x1b4   : > { %3178 = vpow2.f32 %v1436_v18  ;;  %v5073_v32 = vmax.f32 %v3895_v6, %v3899_v57 }
 0x1b5   : > { %v4120_v9 = vpop.eup %3168  ;;  %v1438_v19 = vmul.f32 1.442695, %v1386_v44  ;;  %v1440_v60 = vmul.f32 1.442695, %v1387_v46  ;;  %1481 = vadd.xlane.f32.xlu0 %v1480_v54  ;;  %1920 = vmax.xlane.f32.xlu1 %v5071_v25 }
 0x1b6   : > { %v4125_v37 = vpop.eup %3170  ;;  %v1353_v39 = vpop.xlane.xlu1 %1352 }
 0x1b7   : > { %3180 = vpow2.f32 %v1438_v19  ;;  %v1388_v58 = vsub.f32 %v3840_v27, %v1353_v39  ;;  %v1389_v7 = vsub.f32 %v3845_v34, %v1353_v39  ;;  %v1483_v62 = vadd.f32 %v4125_v37, %v4120_v9  ;;  %v5075_v34 = vld [vmem:[#allocation8_spill] sm:$0xff] }
 0x1b8   : > { %3182 = vpow2.f32 %v1440_v60 }
 0x1b9   : > { %v4131_v5 = vpop.eup %3172  ;;  %v1442_v18 = vmul.f32 1.442695, %v1388_v58  ;;  %v1444_v38 = vmul.f32 1.442695, %v1389_v7  ;;  %1923 = vmax.xlane.f32.xlu0 %v5073_v32  ;;  %1484 = vadd.xlane.f32.xlu1 %v1483_v62  ;;  %v5077_v58 = vmax.f32 %v3907_v20, %v3912_v63  ;;  %v5080_v32 = vld [vmem:[#allocation10_spill] sm:$0xff] }
 0x1ba   : > { %5072 = vst [vmem:[#allocation14_spill] sm:$0xff] %v4131_v5  ;;  %v4136_v44 = vpop.eup %3174  ;;  %v1356_v46 = vpop.xlane.xlu0 %1355 }
 0x1bb   : > { %5074 = vst [vmem:[#allocation15_spill] sm:$0xff] %v4136_v44  ;;  %3184 = vpow2.f32 %v1442_v18  ;;  %v1390_v27 = vsub.f32 %v3859_v49, %v1356_v46  ;;  %v1391_v54 = vsub.f32 %v5075_v34, %v1356_v46  ;;  %v1486_v19 = vadd.f32 %v4136_v44, %v4131_v5  ;;  %v5079_v49 = vld [vmem:[#allocation9_spill] sm:$0xff] }
 0x1bc   : > { %3186 = vpow2.f32 %v1444_v38 }
 0x1bd   : > { %v4142_v60 = vpop.eup %3176  ;;  %v1446_v25 = vmul.f32 1.442695, %v1390_v27  ;;  %v1448_v39 = vmul.f32 1.442695, %v1391_v54  ;;  %1487 = vadd.xlane.f32.xlu0 %v1486_v19  ;;  %1926 = vmax.xlane.f32.xlu1 %v5077_v58 }
 0x1be   : > { %5076 = vst [vmem:[#allocation8_spill] sm:$0xff] %v4142_v60  ;;  %v4147_v7 = vpop.eup %3178  ;;  %v1359_v62 = vpop.xlane.xlu1 %1358 }
 0x1bf   : > { %5078 = vst [vmem:[#allocation16_spill] sm:$0xff] %v4147_v7  ;;  %3188 = vpow2.f32 %v1446_v25  ;;  %v1392_v18 = vsub.f32 %v5079_v49, %v1359_v62  ;;  %v1393_v46 = vsub.f32 %v5080_v32, %v1359_v62  ;;  %v1489_v38 = vadd.f32 %v4147_v7, %v4142_v60  ;;  %v5084_v25 = vld [vmem:[#allocation12_spill] sm:$0xff] }
 0x1c0   : > { %3190 = vpow2.f32 %v1448_v39 }
 0x1c1   : > { %v4153_v34 = vpop.eup %3180  ;;  %v1450_v27 = vmul.f32 1.442695, %v1392_v18  ;;  %v1452_v54 = vmul.f32 1.442695, %v1393_v46  ;;  %1490 = vadd.xlane.f32.xlu1 %v1489_v38 }
 0x1c2   : > { %5081 = vst [vmem:[#allocation9_spill] sm:$0xff] %v4153_v34  ;;  %v4155_v19 = vpop.eup %3182  ;;  %v1362_v58 = vpop.xlane.xlu0 %1361 }
 0x1c3   : > { %5082 = vst [vmem:[#allocation10_spill] sm:$0xff] %v4155_v19  ;;  %3192 = vpow2.f32 %v1450_v27  ;;  %v1394_v5 = vsub.f32 %v5083_v35, %v1362_v58  ;;  %v1395_v44 = vsub.f32 %v5084_v25, %v1362_v58  ;;  %v1492_v62 = vadd.f32 %v4155_v19, %v4153_v34  ;;  %v5085_v25 = vld [vmem:[#allocation13_spill] sm:$0xff] }
 0x1c4   : > { %3194 = vpow2.f32 %v1452_v54 }
 0x1c5   : > { %v4161_v49 = vpop.eup %3184  ;;  %v1454_v39 = vmul.f32 1.442695, %v1394_v5  ;;  %v1456_v32 = vmul.f32 1.442695, %v1395_v44  ;;  %1493 = vadd.xlane.f32.xlu0 %v1492_v62 }
 0x1c6   : > { %v4163_v18 = vpop.eup %3186  ;;  %v1882_v46 = vpop.xlane.xlu0 %1881 }
 0x1c7   : > { %v1365_v38 = vpop.xlane.xlu1 %1364  ;;  %3196 = vpow2.f32 %v1454_v39  ;;  %v1928_v27 = vsub.f32 %v3671_v53, %v1882_v46  ;;  %v1929_v35 = vsub.f32 %v3675_v55, %v1882_v46  ;;  %v1495_v54 = vadd.f32 %v4163_v18, %v4161_v49 }
 0x1c8   : > { %v1396_v58 = vsub.f32 %v3897_v26, %v1365_v38  ;;  %3198 = vpow2.f32 %v1456_v32  ;;  %v1397_v34 = vsub.f32 %v5085_v25, %v1365_v38 }
 0x1c9   : > { %v4171_v5 = vpop.eup %3188  ;;  %v1960_v44 = vmul.f32 1.442695, %v1928_v27  ;;  %v1962_v62 = vmul.f32 1.442695, %v1929_v35  ;;  %1496 = vadd.xlane.f32.xlu1 %v1495_v54 }
 0x1ca   : > { %v1458_v19 = vmul.f32 1.442695, %v1396_v58  ;;  %v4173_v60 = vpop.eup %3190  ;;  %v1460_v39 = vmul.f32 1.442695, %v1397_v34  ;;  %v1888_v53 = vpop.xlane.xlu0 %1887 }
 0x1cb   : > { %v1885_v7 = vpop.xlane.xlu1 %1884  ;;  %3200 = vpow2.f32 %v1960_v44  ;;  %v1932_v55 = vsub.f32 %v3695_v2, %v1888_v53  ;;  %v1933_v26 = vsub.f32 %v3699_v4, %v1888_v53  ;;  %v1498_v38 = vadd.f32 %v4173_v60, %v4171_v5 }
 0x1cc   : > { %v1930_v32 = vsub.f32 %v3683_v59, %v1885_v7  ;;  %3202 = vpow2.f32 %v1962_v62  ;;  %v1931_v46 = vsub.f32 %v3687_v61, %v1885_v7 }
 0x1cd   : > { %v4181_v27 = vpop.eup %3192  ;;  %3204 = vpow2.f32 %v1458_v19  ;;  %v1968_v34 = vmul.f32 1.442695, %v1932_v55  ;;  %v1970_v35 = vmul.f32 1.442695, %v1933_v26  ;;  %1499 = vadd.xlane.f32.xlu0 %v1498_v38  ;;  %v5086_v38 = vld [vmem:[#allocation5_spill] sm:$0xff] }
 0x1ce   : > { %v1964_v58 = vmul.f32 1.442695, %v1930_v32  ;;  %v4183_v25 = vpop.eup %3194  ;;  %3206 = vpow2.f32 %v1460_v39  ;;  %v1966_v2 = vmul.f32 1.442695, %v1931_v46  ;;  %v1894_v4 = vpop.xlane.xlu0 %1893 }
 0x1cf   : > { %v1891_v54 = vpop.xlane.xlu1 %1890  ;;  %3208 = vpow2.f32 %v1968_v34  ;;  %v1936_v59 = vsub.f32 %v3722_v15, %v1894_v4  ;;  %v1937_v61 = vsub.f32 %v3728_v17, %v1894_v4  ;;  %v1501_v44 = vadd.f32 %v4183_v25, %v4181_v27 }
 0x1d0   : > { %v1934_v7 = vsub.f32 %v3707_v8, %v1891_v54  ;;  %3210 = vpow2.f32 %v1970_v35  ;;  %v1935_v19 = vsub.f32 %v3711_v10, %v1891_v54 }
 0x1d1   : > { %v4191_v62 = vpop.eup %3196  ;;  %3212 = vpow2.f32 %v1964_v58  ;;  %v1976_v39 = vmul.f32 1.442695, %v1936_v59  ;;  %v1978_v53 = vmul.f32 1.442695, %v1937_v61  ;;  %1502 = vadd.xlane.f32.xlu1 %v1501_v44 }
 0x1d2   : > { %v1972_v55 = vmul.f32 1.442695, %v1934_v7  ;;  %v4193_v26 = vpop.eup %3198  ;;  %3214 = vpow2.f32 %v1966_v2  ;;  %v1974_v15 = vmul.f32 1.442695, %v1935_v19  ;;  %v1900_v17 = vpop.xlane.xlu0 %1899  ;;  %v5089_v19 = vld [vmem:[#allocation7_spill] sm:$0xff] }
 0x1d3   : > { %v1897_v32 = vpop.xlane.xlu1 %1896  ;;  %3216 = vpow2.f32 %v1976_v39  ;;  %v1940_v8 = vsub.f32 %v3760_v29, %v1900_v17  ;;  %v1941_v10 = vsub.f32 %v3766_v31, %v1900_v17  ;;  %v1504_v35 = vadd.f32 %v4193_v26, %v4191_v62 }
 0x1d4   : > { %v1938_v46 = vsub.f32 %v3741_v22, %v1897_v32  ;;  %3218 = vpow2.f32 %v1978_v53  ;;  %v1939_v34 = vsub.f32 %v5086_v38, %v1897_v32  ;;  %v5088_v22 = vld [vmem:[#allocation6_spill] sm:$0xff] }
 0x1d5   : > { %v4201_v58 = vpop.eup %3200  ;;  %3220 = vpow2.f32 %v1972_v55  ;;  %v1984_v2 = vmul.f32 1.442695, %v1940_v8  ;;  %v1986_v4 = vmul.f32 1.442695, %v1941_v10  ;;  %1505 = vadd.xlane.f32.xlu0 %v1504_v35 }
 0x1d6   : > { %5087 = vst [vmem:[#allocation11_spill] sm:$0xff] %v4201_v58  ;;  %v1980_v54 = vmul.f32 1.442695, %v1938_v46  ;;  %v4203_v59 = vpop.eup %3202  ;;  %3222 = vpow2.f32 %v1974_v15  ;;  %v1982_v29 = vmul.f32 1.442695, %v1939_v34  ;;  %v854_v34 = vpop.f32.mrb[32].mxu0 }
 0x1d7   : > { %v1903_v31 = vpop.xlane.xlu1 %1902  ;;  %v4205_v61 = vpop.eup %3204  ;;  %3224 = vpow2.f32 %v1984_v2  ;;  %v2024_v39 = vadd.f32 %v4203_v59, %v4201_v58 }
 0x1d8   : > { %v1942_v7 = vsub.f32 %v5088_v22, %v1903_v31  ;;  %v1943_v44 = vsub.f32 %v5089_v19, %v1903_v31  ;;  %v4211_v53 = vpop.eup %3206  ;;  %3226 = vpow2.f32 %v1986_v4  ;;  %v856_v4 = vpop.f32.mrb[33].mxu0 }
 0x1d9   : > { %v4213_v55 = vpop.eup %3208  ;;  %3228 = vpow2.f32 %v1980_v54  ;;  %v1507_v32 = vadd.f32 %v4211_v53, %v4205_v61  ;;  %2025 = vadd.xlane.f32.xlu0 %v2024_v39 }
 0x1da   : > { %5090 = vst [vmem:[#allocation12_spill] sm:$0xff] %v4213_v55  ;;  %v1988_v15 = vmul.f32 1.442695, %v1942_v7  ;;  %v1990_v17 = vmul.f32 1.442695, %v1943_v44  ;;  %v4217_v8 = vpop.eup %3210  ;;  %3230 = vpow2.f32 %v1982_v29  ;;  %v860_v29 = vpop.f32.mrb[34].mxu0 }
 0x1db   : > { %5091 = vst [vmem:[#allocation13_spill] sm:$0xff] %v4217_v8  ;;  %v4219_v10 = vpop.eup %3212  ;;  %1508 = vadd.xlane.f32.xlu1 %v1507_v32  ;;  %v2030_v46 = vadd.f32 %v4217_v8, %v4213_v55  ;;  %v2937_v7 = vpack.c.bf16 %v860_v29, %v854_v34  ;;  %v862_v44 = vpop.f32.mrb[35].mxu0 }
 0x1dc   : > { %5092 = vst [vmem:[#allocation5_spill] sm:$0xff] %v4219_v10  ;;  %3232 = vpow2.f32 %v1988_v15  ;;  %v4223_v38 = vpop.eup %3214  ;;  %v866_v32 = vpop.f32.mrb[36].mxu0 }
 0x1dd   : > { %3234 = vpow2.f32 %v1990_v17  ;;  %v4225_v35 = vpop.eup %3216  ;;  %v2027_v2 = vadd.f32 %v4223_v38, %v4219_v10  ;;  %2031 = vadd.xlane.f32.xlu0 %v2030_v46  ;;  %v2935_v17 = vpack.c.bf16 %v862_v44, %v856_v4  ;;  %v868_v46 = vpop.f32.mrb[37].mxu0 }
 0x1de   : > { %5093 = vst [vmem:[#allocation6_spill] sm:$0xff] %v4225_v35  ;;  %v4229_v54 = vpop.eup %3218 }
 0x1df   : > { %5094 = vst [vmem:[#allocation7_spill] sm:$0xff] %v4229_v54  ;;  %v4231_v31 = vpop.eup %3220  ;;  %2028 = vadd.xlane.f32.xlu1 %v2027_v2  ;;  %v2036_v22 = vadd.f32 %v4229_v54, %v4225_v35  ;;  %v872_v2 = vpop.f32.mrb[38].mxu0  ;;  %2936 = vmatprep.subr.bf16.mxu1 %v2935_v17 }
 0x1e0   : > { %5095 = vst [vmem:[#allocation17_spill] sm:$0xff] %v4231_v31  ;;  %v4235_v19 = vpop.eup %3222  ;;  %v2941_v35 = vpack.c.bf16 %v872_v2, %v866_v32  ;;  %v874_v54 = vpop.f32.mrb[39].mxu0  ;;  %2938 = vmatpush1.bf16.msra.mxu1 %v2937_v7 }
 0x1e1   : > { %5096 = vst [vmem:[#allocation18_spill] sm:$0xff] %v4235_v19  ;;  %v4237_v39 = vpop.eup %3224  ;;  %v2033_v15 = vadd.f32 %v4235_v19, %v4231_v31  ;;  %2037 = vadd.xlane.f32.xlu0 %v2036_v22  ;;  %v2939_v22 = vpack.c.bf16 %v874_v54, %v868_v46  ;;  %v878_v44 = vpop.f32.mrb[40].mxu0 }
 0x1e2   : > { %5097 = vst [vmem:[#allocation19_spill] sm:$0xff] %v4237_v39  ;;  %v4241_v55 = vpop.eup %3226 }
 0x1e3   : > { %5098 = vst [vmem:[#allocation20_spill] sm:$0xff] %v4241_v55  ;;  %v4243_v8 = vpop.eup %3228  ;;  %2034 = vadd.xlane.f32.xlu1 %v2033_v15  ;;  %v2042_v34 = vadd.f32 %v4241_v55, %v4237_v39  ;;  %v880_v15 = vpop.f32.mrb[41].mxu0  ;;  %2940 = vmatprep.subr.bf16.mxu1 %v2939_v22 }
 0x1e4   : > { %5099 = vst [vmem:[#allocation21_spill] sm:$0xff] %v4243_v8  ;;  %v4247_v29 = vpop.eup %3230  ;;  %v884_v39 = vpop.f32.mrb[42].mxu0  ;;  %2942 = vmatpush1.bf16.msra.mxu1 %v2941_v35 }
 0x1e5   : > { %5100 = vst [vmem:[#allocation22_spill] sm:$0xff] %v4247_v29  ;;  %v2039_v4 = vadd.f32 %v4247_v29, %v4243_v8  ;;  %2043 = vadd.xlane.f32.xlu0 %v2042_v34  ;;  %v2945_v32 = vpack.c.bf16 %v884_v39, %v878_v44  ;;  %v886_v2 = vpop.f32.mrb[43].mxu0 }
 0x1e6   : > { %v4249_v31 = vpop.eup %3232  ;;  %v2943_v7 = vpack.c.bf16 %v886_v2, %v880_v15  ;;  %v890_v55 = vpop.f32.mrb[44].mxu0 }
 0x1e7   : > { %5101 = vst [vmem:[#allocation23_spill] sm:$0xff] %v4249_v31  ;;  %v4253_v58 = vpop.eup %3234  ;;  %2040 = vadd.xlane.f32.xlu1 %v2039_v4  ;;  %v892_v19 = vpop.f32.mrb[45].mxu0 }
 0x1e8   : > { %5102 = vst [vmem:[#allocation24_spill] sm:$0xff] %v4253_v58  ;;  %v2045_v17 = vadd.f32 %v4253_v58, %v4249_v31  ;;  %v896_v8 = vpop.f32.mrb[46].mxu0  ;;  %2944 = vmatprep.subr.bf16.mxu1 %v2943_v7 }
 0x1e9   : > { %v2949_v54 = vpack.c.bf16 %v896_v8, %v890_v55  ;;  %v898_v46 = vpop.f32.mrb[47].mxu0  ;;  %2946 = vmatpush1.bf16.msra.mxu1 %v2945_v32 }
 0x1ea   : > { %v2947_v34 = vpack.c.bf16 %v898_v46, %v892_v19  ;;  %v902_v29 = vpop.f32.mrb[48].mxu0 }
 0x1eb   : > { %2046 = vadd.xlane.f32.xlu1 %v2045_v17  ;;  %v904_v4 = vpop.f32.mrb[49].mxu0 }
 0x1ec   : > { %v908_v10 = vpop.f32.mrb[50].mxu0  ;;  %2948 = vmatprep.subr.bf16.mxu1 %v2947_v34 }
 0x1ed   : > { %v2953_v31 = vpack.c.bf16 %v908_v10, %v902_v29  ;;  %v910_v58 = vpop.f32.mrb[51].mxu0  ;;  %2950 = vmatpush1.bf16.msra.mxu1 %v2949_v54 }
 0x1ee   : > { %v2951_v39 = vpack.c.bf16 %v910_v58, %v904_v4  ;;  %v914_v22 = vpop.f32.mrb[52].mxu0 }
 0x1ef   : > { %v916_v35 = vpop.f32.mrb[53].mxu0 }
 0x1f0   : > { %v920_v44 = vpop.f32.mrb[54].mxu0  ;;  %2952 = vmatprep.subr.bf16.mxu1 %v2951_v39 }
 0x1f1   : > { %v2957_v15 = vpack.c.bf16 %v920_v44, %v914_v22  ;;  %v922_v17 = vpop.f32.mrb[55].mxu0  ;;  %2954 = vmatpush1.bf16.msra.mxu1 %v2953_v31  ;;  %v4259_v22 = vpop.f32.mrb[32].mxu1 }
 0x1f2   : > { %v2955_v2 = vpack.c.bf16 %v922_v17, %v916_v35  ;;  %v926_v55 = vpop.f32.mrb[56].mxu0  ;;  %5103 = vst [vmem:[#allocation25_spill] sm:$0xff] %v4259_v22  ;;  %v1113_v35 = vpop.f32.mrb[33].mxu1 }
 0x1f3   : > { %v928_v8 = vpop.f32.mrb[57].mxu0  ;;  %v4261_v44 = vpop.f32.mrb[34].mxu1 }
 0x1f4   : > { %v932_v32 = vpop.f32.mrb[58].mxu0  ;;  %2956 = vmatprep.subr.bf16.mxu1 %v2955_v2  ;;  %5104 = vst [vmem:[#allocation26_spill] sm:$0xff] %v4261_v44  ;;  %v1119_v17 = vpop.f32.mrb[35].mxu1 }
 0x1f5   : > { %v2961_v19 = vpack.c.bf16 %v932_v32, %v926_v55  ;;  %v934_v7 = vpop.f32.mrb[59].mxu0  ;;  %2958 = vmatpush1.bf16.msra.mxu1 %v2957_v15  ;;  %v2999_v2 = vpack.c.bf16 %v1119_v17, %v1113_v35  ;;  %v4265_v55 = vpop.f32.mrb[36].mxu1 }
 0x1f6   : > { %v2959_v46 = vpack.c.bf16 %v934_v7, %v928_v8  ;;  %v938_v10 = vpop.f32.mrb[60].mxu0  ;;  %5105 = vst [vmem:[#allocation27_spill] sm:$0xff] %v4265_v55  ;;  %v4267_v8 = vpop.f32.mrb[37].mxu1 }
 0x1f7   : > { %v940_v29 = vpop.f32.mrb[61].mxu0  ;;  %5106 = vst [vmem:[#allocation28_spill] sm:$0xff] %v4267_v8  ;;  %v4269_v32 = vpop.f32.mrb[38].mxu1 }
 0x1f8   : > { %v944_v54 = vpop.f32.mrb[62].mxu0  ;;  %2960 = vmatprep.subr.bf16.mxu1 %v2959_v46  ;;  %5107 = vst [vmem:[#allocation29_spill] sm:$0xff] %v4269_v32  ;;  %v4273_v7 = vpop.f32.mrb[39].mxu1 }
 0x1f9   : > { %v2965_v58 = vpack.c.bf16 %v944_v54, %v938_v10  ;;  %v946_v34 = vpop.f32.mrb[63].mxu0  ;;  %2962 = vmatpush1.bf16.msra.mxu1 %v2961_v19  ;;  %5108 = vst [vmem:[#allocation30_spill] sm:$0xff] %v4273_v7  ;;  %v4277_v10 = vpop.f32.mrb[40].mxu1 }
 0x1fa   : > { %v2963_v4 = vpack.c.bf16 %v946_v34, %v940_v29  ;;  %v4257_v39 = vpop.f32.mrb[64].mxu0  ;;  %5109 = vst [vmem:[#allocation31_spill] sm:$0xff] %v4277_v10  ;;  %v4279_v29 = vpop.f32.mrb[41].mxu1 }
 0x1fb   : > { %v952_v31 = vpop.f32.mrb[65].mxu0  ;;  %5110 = vst [vmem:[#allocation32_spill] sm:$0xff] %v4279_v29  ;;  %v4281_v54 = vpop.f32.mrb[42].mxu1  ;;  %v5124_v29 = vld [vmem:[#allocation14_spill] sm:$0xff] }
 0x1fc   : > { %1622 = vmatprep.mubr.f32.mxu0 %v952_v31  ;;  %2964 = vmatprep.subr.bf16.mxu1 %v2963_v4  ;;  %5111 = vst [vmem:[#allocation33_spill] sm:$0xff] %v4281_v54 }
 0x1fd   : > { %2966 = vmatpush1.bf16.msra.mxu1 %v2965_v58 }
 0x1fe   : > { %3000 = vmatprep.subr.bf16.mxu1 %v2999_v2 }
 0x22a   : > { %v1464_v34 = vpop.xlane.xlu0 %1463 }
 0x22b   : > { %3236 = vrcp.f32 %v1464_v34 }
 0x22e   : > { %v1906_v4 = vpop.xlane.xlu0 %1905  ;;  %v1467_v31 = vpop.xlane.xlu1 %1466 }
 0x22f   : > { %v1944_v35 = vsub.f32 %v3798_v43, %v1906_v4  ;;  %v1945_v17 = vsub.f32 %v3804_v45, %v1906_v4  ;;  %3238 = vrcp.f32 %v1467_v31 }
 0x231   : > { %v1992_v2 = vmul.f32 1.442695, %v1944_v35  ;;  %v1994_v19 = vmul.f32 1.442695, %v1945_v17 }
 0x232   : > { %v1470_v46 = vpop.xlane.xlu0 %1469  ;;  %v1909_v15 = vpop.xlane.xlu1 %1908 }
 0x233   : > { %3240 = vpow2.f32 %v1992_v2  ;;  %v1946_v55 = vsub.f32 %v3817_v52, %v1909_v15  ;;  %v1947_v32 = vsub.f32 %v3823_v1, %v1909_v15 }
 0x234   : > { %3242 = vpow2.f32 %v1994_v19  ;;  %v4297_v19 = vpop.f32.mrb[66].mxu0 }
 0x235   : > { %3244 = vrcp.f32 %v1470_v46  ;;  %v1996_v58 = vmul.f32 1.442695, %v1946_v55  ;;  %v1998_v34 = vmul.f32 1.442695, %v1947_v32  ;;  %v3237_v8 = vpop.eup %3236 }
 0x236   : > { %v1912_v10 = vpop.xlane.xlu0 %1911  ;;  %v1473_v54 = vpop.xlane.xlu1 %1472  ;;  %v1512_v1 = vmul.f32 %v3237_v8, %v4041_v3  ;;  %v1511_v55 = vmul.f32 %v3237_v8, %v4034_v50 }
 0x237   : > { %3246 = vpow2.f32 %v1996_v58  ;;  %v1948_v43 = vsub.f32 %v3836_v21, %v1912_v10  ;;  %v1949_v45 = vsub.f32 %v3842_v28, %v1912_v10 }
 0x238   : > { %3248 = vpow2.f32 %v1998_v34 }
 0x239   : > { %v3239_v4 = vpop.eup %3238  ;;  %v2000_v31 = vmul.f32 1.442695, %v1948_v43  ;;  %v2002_v35 = vmul.f32 1.442695, %v1949_v45  ;;  %3250 = vrcp.f32 %v1473_v54  ;;  %v4299_v54 = vpop.f32.mrb[67].mxu0 }
 0x23a   : > { %v1476_v52 = vpop.xlane.xlu0 %1475  ;;  %v1915_v17 = vpop.xlane.xlu1 %1914  ;;  %v1515_v15 = vmul.f32 %v3239_v4, %v4055_v11  ;;  %v1514_v32 = vmul.f32 %v3239_v4, %v4049_v56 }
 0x23b   : > { %3252 = vpow2.f32 %v2000_v31  ;;  %v1950_v21 = vsub.f32 %v3855_v48, %v1915_v17  ;;  %v1951_v28 = vsub.f32 %v3861_v14, %v1915_v17  ;;  %v4309_v43 = vpop.f32.mrb[68].mxu0 }
 0x23c   : > { %3254 = vpow2.f32 %v2002_v35  ;;  %v2903_v46 = vpack.c.bf16 %v1515_v15, %v1512_v1  ;;  %v2905_v10 = vpack.c.bf16 %v1514_v32, %v1511_v55  ;;  %v4311_v45 = vpop.f32.mrb[69].mxu0 }
 0x23d   : > { %v4301_v58 = vpop.eup %3240  ;;  %3256 = vrcp.f32 %v1476_v52  ;;  %v2004_v3 = vmul.f32 1.442695, %v1950_v21  ;;  %v2006_v11 = vmul.f32 1.442695, %v1951_v28  ;;  %v4322_v21 = vpop.f32.mrb[70].mxu0 }
 0x23e   : > { %v4303_v50 = vpop.eup %3242  ;;  %v1918_v56 = vpop.xlane.xlu0 %1917  ;;  %2904 = vmatprep.subr.bf16.mxu0 %v2903_v46 }
 0x23f   : > { %v1479_v8 = vpop.xlane.xlu1 %1478  ;;  %v3245_v48 = vpop.eup %3244  ;;  %3258 = vpow2.f32 %v2004_v3  ;;  %v1952_v14 = vsub.f32 %v3871_v47, %v1918_v56  ;;  %v1953_v2 = vsub.f32 %v3875_v42, %v1918_v56  ;;  %2906 = vmatpush1.bf16.xpose.msra.mxu0 %v2905_v10  ;;  %v2048_v34 = vadd.f32 %v4303_v50, %v4301_v58 }
 0x240   : > { %3260 = vpow2.f32 %v2006_v11  ;;  %v1518_v42 = vmul.f32 %v3245_v48, %v4069_v16  ;;  %v1517_v46 = vmul.f32 %v3245_v48, %v4064_v51  ;;  %v4327_v3 = vpop.f32.mrb[71].mxu0 }
 0x241   : > { %v4313_v4 = vpop.eup %3246  ;;  %v2008_v31 = vmul.f32 1.442695, %v1952_v14  ;;  %v2010_v35 = vmul.f32 1.442695, %v1953_v2  ;;  %3262 = vrcp.f32 %v1479_v8  ;;  %2049 = vadd.xlane.f32.xlu0 %v2048_v34  ;;  %v4337_v48 = vpop.f32.mrb[72].mxu0 }
 0x242   : > { %v4315_v52 = vpop.eup %3248  ;;  %v1482_v47 = vpop.xlane.xlu0 %1481 }
 0x243   : > { %v1921_v17 = vpop.xlane.xlu1 %1920  ;;  %v3251_v1 = vpop.eup %3250  ;;  %3264 = vpow2.f32 %v2008_v31  ;;  %v2051_v32 = vadd.f32 %v4315_v52, %v4313_v4 }
 0x244   : > { %v1954_v15 = vsub.f32 %v3883_v33, %v1921_v17  ;;  %v1955_v55 = vsub.f32 %v3887_v12, %v1921_v17  ;;  %3266 = vpow2.f32 %v2010_v35  ;;  %v1521_v28 = vmul.f32 %v3251_v1, %v4081_v41  ;;  %v4339_v31 = vpop.f32.mrb[73].mxu0 }
 0x245   : > { %v1520_v10 = vmul.f32 %v3251_v1, %v4076_v24  ;;  %v4329_v16 = vpop.eup %3252  ;;  %2052 = vadd.xlane.f32.xlu1 %v2051_v32  ;;  %3268 = vrcp.f32 %v1482_v47 }
 0x246   : > { %v2012_v11 = vmul.f32 1.442695, %v1954_v15  ;;  %v2014_v33 = vmul.f32 1.442695, %v1955_v55  ;;  %v4331_v12 = vpop.eup %3254  ;;  %v1924_v56 = vpop.xlane.xlu0 %1923  ;;  %v2907_v8 = vpack.c.bf16 %v1521_v28, %v1518_v42 }
 0x247   : > { %v1485_v14 = vpop.xlane.xlu1 %1484  ;;  %v2909_v2 = vpack.c.bf16 %v1520_v10, %v1517_v46  ;;  %v3257_v34 = vpop.eup %3256  ;;  %v1956_v51 = vsub.f32 %v3895_v6, %v1924_v56  ;;  %v1957_v24 = vsub.f32 %v3899_v57, %v1924_v56  ;;  %v2054_v41 = vadd.f32 %v4331_v12, %v4329_v16 }
 0x248   : > { %3270 = vpow2.f32 %v2012_v11  ;;  %2908 = vmatprep.subr.bf16.mxu0 %v2907_v8  ;;  %v1524_v57 = vmul.f32 %v3257_v34, %v4092_v13  ;;  %v4350_v46 = vpop.f32.mrb[74].mxu0  ;;  %v1523_v11 = vmul.f32 %v3257_v34, %v4087_v0 }
 0x249   : > { %3272 = vpow2.f32 %v2014_v33  ;;  %v4341_v35 = vpop.eup %3258  ;;  %v2016_v47 = vmul.f32 1.442695, %v1956_v51  ;;  %v2018_v17 = vmul.f32 1.442695, %v1957_v24  ;;  %2910 = vmatpush1.bf16.xpose.msra.mxu0 %v2909_v2  ;;  %2055 = vadd.xlane.f32.xlu0 %v2054_v41  ;;  %v4355_v13 = vpop.f32.mrb[75].mxu0 }
 0x24a   : > { %3274 = vrcp.f32 %v1485_v14  ;;  %v4343_v42 = vpop.eup %3260  ;;  %v1488_v15 = vpop.xlane.xlu0 %1487 }
 0x24b   : > { %v1927_v6 = vpop.xlane.xlu1 %1926  ;;  %v3263_v1 = vpop.eup %3262  ;;  %3276 = vpow2.f32 %v2016_v47  ;;  %v2057_v28 = vadd.f32 %v4343_v42, %v4341_v35 }
 0x24c   : > { %v1958_v55 = vsub.f32 %v3907_v20, %v1927_v6  ;;  %v1959_v32 = vsub.f32 %v3912_v63, %v1927_v6  ;;  %3278 = vpow2.f32 %v2018_v17  ;;  %v1527_v10 = vmul.f32 %v3263_v1, %v4103_v23  ;;  %v4363_v0 = vpop.f32.mrb[76].mxu0 }
 0x24d   : > { %v1526_v33 = vmul.f32 %v3263_v1, %v4098_v36  ;;  %v4357_v56 = vpop.eup %3264  ;;  %2058 = vadd.xlane.f32.xlu1 %v2057_v28  ;;  %3280 = vrcp.f32 %v1488_v15  ;;  %v4365_v36 = vpop.f32.mrb[43].mxu1 }
 0x24e   : > { %v2020_v8 = vmul.f32 1.442695, %v1958_v55  ;;  %v2022_v20 = vmul.f32 1.442695, %v1959_v32  ;;  %v4359_v63 = vpop.eup %3266  ;;  %v2911_v14 = vpack.c.bf16 %v1527_v10, %v1524_v57  ;;  %5112 = vst [vmem:[#allocation34_spill] sm:$0xff] %v4365_v36  ;;  %v4369_v41 = vpop.f32.mrb[77].mxu0 }
 0x24f   : > { %v1491_v2 = vpop.xlane.xlu1 %1490  ;;  %v2913_v51 = vpack.c.bf16 %v1526_v33, %v1523_v11  ;;  %v2060_v23 = vadd.f32 %v4359_v63, %v4357_v56  ;;  %v3269_v34 = vpop.eup %3268 }
 0x250   : > { %3282 = vpow2.f32 %v2020_v8  ;;  %2912 = vmatprep.subr.bf16.mxu0 %v2911_v14  ;;  %v4377_v15 = vpop.f32.mrb[78].mxu0  ;;  %v4379_v55 = vpop.f32.mrb[44].mxu1  ;;  %v1530_v32 = vmul.f32 %v3269_v34, %v4114_v30  ;;  %v1529_v10 = vmul.f32 %v3269_v34, %v4109_v40 }
 0x251   : > { %3284 = vpow2.f32 %v2022_v20  ;;  %2914 = vmatpush1.bf16.xpose.msra.mxu0 %v2913_v51  ;;  %2061 = vadd.xlane.f32.xlu0 %v2060_v23  ;;  %5114 = vst [vmem:[#allocation36_spill] sm:$0xff] %v4379_v55  ;;  %v4385_v33 = vpop.f32.mrb[79].mxu0  ;;  %v4387_v8 = vpop.f32.mrb[45].mxu1  ;;  %v5123_v55 = vld [vmem:[#allocation16_spill] sm:$0xff] }
 0x252   : > { %v4371_v47 = vpop.eup %3270  ;;  %3286 = vrcp.f32 %v1491_v2  ;;  %v1494_v6 = vpop.xlane.xlu0 %1493  ;;  %5115 = vst [vmem:[#allocation37_spill] sm:$0xff] %v4387_v8 }
 0x253   : > { %5113 = vst [vmem:[#allocation35_spill] sm:$0xff] %v4371_v47  ;;  %v4373_v17 = vpop.eup %3272  ;;  %v4391_v14 = vpop.f32.mrb[46].mxu1  ;;  %3288 = vrcp.f32 %v1494_v6 }
 0x254   : > { %v3275_v57 = vpop.eup %3274  ;;  %v2063_v1 = vadd.f32 %v4373_v17, %v4371_v47  ;;  %5117 = vst [vmem:[#allocation39_spill] sm:$0xff] %v4391_v14  ;;  %v4399_v23 = vpop.f32.mrb[80].mxu0 }
 0x255   : > { %v1533_v28 = vmul.f32 %v3275_v57, %v4125_v37  ;;  %v1532_v11 = vmul.f32 %v3275_v57, %v4120_v9  ;;  %v4389_v20 = vpop.eup %3276  ;;  %v4401_v57 = vpop.f32.mrb[47].mxu1 }
 0x256   : > { %5116 = vst [vmem:[#allocation38_spill] sm:$0xff] %v4389_v20  ;;  %2064 = vadd.xlane.f32.xlu1 %v2063_v1  ;;  %v4393_v2 = vpop.eup %3278  ;;  %v1497_v40 = vpop.xlane.xlu1 %1496  ;;  %5119 = vst [vmem:[#allocation41_spill] sm:$0xff] %v4401_v57 }
 0x257   : > { %5118 = vst [vmem:[#allocation40_spill] sm:$0xff] %v4393_v2  ;;  %v2915_v51 = vpack.c.bf16 %v1533_v28, %v1530_v32  ;;  %v2917_v30 = vpack.c.bf16 %v1532_v11, %v1529_v10  ;;  %v2066_v9 = vadd.f32 %v4393_v2, %v4389_v20  ;;  %v3281_v34 = vpop.eup %3280  ;;  %3290 = vrcp.f32 %v1497_v40  ;;  %v4403_v1 = vpop.f32.mrb[81].mxu0  ;;  %v5122_v40 = vld [vmem:[#allocation15_spill] sm:$0xff] }
 0x258   : > { %v1536_v37 = vmul.f32 %v3281_v34, %v5122_v40  ;;  %v1535_v36 = vmul.f32 %v3281_v34, %v5124_v29  ;;  %v4421_v6 = vpop.f32.mrb[48].mxu1 }
 0x259   : > { %2916 = vmatprep.subr.bf16.mxu0 %v2915_v51  ;;  %2067 = vadd.xlane.f32.xlu0 %v2066_v9  ;;  %v4413_v51 = vpop.f32.mrb[82].mxu0  ;;  %5126 = vst [vmem:[#allocation15_spill] sm:$0xff] %v4421_v6  ;;  %v4423_v8 = vpop.f32.mrb[49].mxu1 }
 0x25a   : > { %v4405_v24 = vpop.eup %3282  ;;  %2918 = vmatpush1.bf16.xpose.msra.mxu0 %v2917_v30  ;;  %v1500_v10 = vpop.xlane.xlu0 %1499  ;;  %v5125_v30 = vld [vmem:[#allocation8_spill] sm:$0xff]  ;;  %5127 = vst [vmem:[#allocation16_spill] sm:$0xff] %v4423_v8 }
 0x25b   : > { %5120 = vst [vmem:[#allocation42_spill] sm:$0xff] %v4405_v24  ;;  %v4409_v32 = vpop.eup %3284  ;;  %v4419_v7 = vpop.f32.mrb[83].mxu0  ;;  %3292 = vrcp.f32 %v1500_v10  ;;  %v5130_v10 = vld [vmem:[#allocation10_spill] sm:$0xff] }
 0x25c   : > { %5121 = vst [vmem:[#allocation43_spill] sm:$0xff] %v4409_v32  ;;  %v3287_v28 = vpop.eup %3286  ;;  %v2069_v11 = vadd.f32 %v4409_v32, %v4405_v24  ;;  %v4425_v44 = vpop.f32.mrb[50].mxu1 }
 0x25d   : > { %v1539_v14 = vmul.f32 %v3287_v28, %v5123_v55  ;;  %v1538_v9 = vmul.f32 %v3287_v28, %v5125_v30  ;;  %5128 = vst [vmem:[#allocation14_spill] sm:$0xff] %v4425_v44  ;;  %v4429_v40 = vpop.f32.mrb[84].mxu0  ;;  %v3289_v29 = vpop.eup %3288 }
 0x25e   : > { %2070 = vadd.xlane.f32.xlu1 %v2069_v11  ;;  %v1503_v24 = vpop.xlane.xlu1 %1502  ;;  %v4431_v34 = vpop.f32.mrb[51].mxu1  ;;  %v1542_v11 = vmul.f32 %v3289_v29, %v5130_v10 }
 0x25f   : > { %v2919_v57 = vpack.c.bf16 %v1539_v14, %v1536_v37  ;;  %v2921_v22 = vpack.c.bf16 %v1538_v9, %v1535_v36  ;;  %3294 = vrcp.f32 %v1503_v24  ;;  %5129 = vst [vmem:[#allocation8_spill] sm:$0xff] %v4431_v34  ;;  %v4433_v28 = vpop.f32.mrb[85].mxu0  ;;  %v5131_v9 = vld [vmem:[#allocation9_spill] sm:$0xff]  ;;  %v4445_v44 = vpop.f32.mrb[52].mxu1 }
 0x260   : > { %v1541_v55 = vmul.f32 %v3289_v29, %v5131_v9  ;;  %5132 = vst [vmem:[#allocation10_spill] sm:$0xff] %v4445_v44  ;;  %v4447_v32 = vpop.f32.mrb[53].mxu1 }
 0x261   : > { %2920 = vmatprep.subr.bf16.mxu0 %v2919_v57  ;;  %v3291_v36 = vpop.eup %3290  ;;  %v4441_v57 = vpop.f32.mrb[86].mxu0  ;;  %5133 = vst [vmem:[#allocation9_spill] sm:$0xff] %v4447_v32 }
 0x262   : > { %2922 = vmatpush1.bf16.xpose.msra.mxu0 %v2921_v22  ;;  %v1506_v37 = vpop.xlane.xlu0 %1505  ;;  %v1545_v30 = vmul.f32 %v3291_v36, %v4163_v18  ;;  %v1544_v6 = vmul.f32 %v3291_v36, %v4161_v49  ;;  %v4443_v24 = vpop.f32.mrb[87].mxu0 }
 0x263   : > { %v4449_v14 = vpop.f32.mrb[54].mxu1  ;;  %3296 = vrcp.f32 %v1506_v37  ;;  %v4453_v49 = vpop.f32.mrb[88].mxu0 }
 0x264   : > { %v2923_v22 = vpack.c.bf16 %v1545_v30, %v1542_v11  ;;  %v2925_v20 = vpack.c.bf16 %v1544_v6, %v1541_v55  ;;  %5134 = vst [vmem:[#allocation44_spill] sm:$0xff] %v4449_v14  ;;  %v4455_v36 = vpop.f32.mrb[55].mxu1  ;;  %v4459_v55 = vpop.f32.mrb[89].mxu0 }
 0x265   : > { %v3293_v8 = vpop.eup %3292  ;;  %5135 = vst [vmem:[#allocation45_spill] sm:$0xff] %v4455_v36  ;;  %v4465_v18 = vpop.f32.mrb[90].mxu0 }
 0x266   : > { %v2026_v10 = vpop.xlane.xlu0 %2025  ;;  %2924 = vmatprep.subr.bf16.mxu0 %v2923_v22  ;;  %v1548_v37 = vmul.f32 %v3293_v8, %v4173_v60  ;;  %v1547_v9 = vmul.f32 %v3293_v8, %v4171_v5  ;;  %v4469_v32 = vpop.f32.mrb[56].mxu1 }
 0x267   : > { %5136 = vst [vmem:[#allocation46_spill] sm:$0xff] %v4469_v32  ;;  %v4471_v36 = vpop.f32.mrb[57].mxu1 }
 0x268   : > { %v1509_v29 = vpop.xlane.xlu1 %1508  ;;  %5137 = vst [vmem:[#allocation47_spill] sm:$0xff] %v4471_v36  ;;  %v4473_v60 = vpop.f32.mrb[58].mxu1 }
 0x269   : > { %3298 = vrcp.f32 %v1509_v29  ;;  %v3295_v11 = vpop.eup %3294  ;;  %v4467_v29 = vpop.f32.mrb[91].mxu0  ;;  %5138 = vst [vmem:[#allocation48_spill] sm:$0xff] %v4473_v60 }
 0x26a   : > { %2926 = vmatpush1.bf16.xpose.msra.mxu0 %v2925_v20  ;;  %3300 = vrcp.f32 %v2026_v10  ;;  %v1551_v30 = vmul.f32 %v3295_v11, %v4183_v25  ;;  %v1550_v22 = vmul.f32 %v3295_v11, %v4181_v27  ;;  %v2032_v20 = vpop.xlane.xlu0 %2031  ;;  %v4477_v25 = vpop.f32.mrb[92].mxu0 }
 0x26b   : > { %v4481_v10 = vpop.f32.mrb[93].mxu0 }
 0x26c   : > { %v2029_v44 = vpop.xlane.xlu1 %2028  ;;  %v2927_v6 = vpack.c.bf16 %v1551_v30, %v1548_v37  ;;  %v2929_v14 = vpack.c.bf16 %v1550_v22, %v1547_v9 }
 0x26d   : > { %3302 = vrcp.f32 %v2029_v44  ;;  %v3297_v8 = vpop.eup %3296  ;;  %v4479_v44 = vpop.f32.mrb[59].mxu1 }
 0x26e   : > { %2928 = vmatprep.subr.bf16.mxu0 %v2927_v6  ;;  %3304 = vrcp.f32 %v2032_v20  ;;  %5139 = vst [vmem:[#allocation49_spill] sm:$0xff] %v4479_v44  ;;  %v1554_v9 = vmul.f32 %v3297_v8, %v4193_v26  ;;  %v1553_v20 = vmul.f32 %v3297_v8, %v4191_v62  ;;  %v4493_v32 = vpop.f32.mrb[60].mxu1  ;;  %v2038_v60 = vpop.xlane.xlu0 %2037 }
 0x26f   : > { %v4485_v37 = vpop.f32.mrb[94].mxu0  ;;  %5140 = vst [vmem:[#allocation50_spill] sm:$0xff] %v4493_v32  ;;  %v4495_v36 = vpop.f32.mrb[61].mxu1 }
 0x270   : > { %v2035_v5 = vpop.xlane.xlu1 %2034  ;;  %5141 = vst [vmem:[#allocation51_spill] sm:$0xff] %v4495_v36  ;;  %v4497_v2 = vpop.f32.mrb[62].mxu1  ;;  %v5148_v36 = vld [vmem:[#allocation22_spill] sm:$0xff] }
 0x271   : > { %3306 = vrcp.f32 %v2035_v5  ;;  %5142 = vst [vmem:[#allocation52_spill] sm:$0xff] %v4497_v2  ;;  %v5146_v2 = vld [vmem:[#allocation13_spill] sm:$0xff] }
 0x272   : > { %2930 = vmatpush1.bf16.xpose.msra.mxu0 %v2929_v14  ;;  %v4491_v14 = vpop.f32.mrb[95].mxu0 }
 0x273   : > { %v3299_v6 = vpop.eup %3298 }
 0x274   : > { %v2041_v30 = vpop.xlane.xlu1 %2040  ;;  %v1557_v22 = vmul.f32 %v3299_v6, %v4211_v53  ;;  %v1556_v5 = vmul.f32 %v3299_v6, %v4205_v61  ;;  %v3301_v27 = vpop.eup %3300  ;;  %v5145_v61 = vld [vmem:[#allocation11_spill] sm:$0xff] }
 0x275   : > { %3308 = vrcp.f32 %v2041_v30  ;;  %v2074_v26 = vmul.f32 %v3301_v27, %v4203_v59  ;;  %v4503_v53 = vpop.f32.mrb[63].mxu1  ;;  %v2073_v32 = vmul.f32 %v3301_v27, %v5145_v61  ;;  %v5147_v27 = vld [vmem:[#allocation17_spill] sm:$0xff] }
 0x276   : > { %v2931_v34 = vpack.c.bf16 %v1557_v22, %v1554_v9  ;;  %v2933_v11 = vpack.c.bf16 %v1556_v5, %v1553_v20  ;;  %3310 = vrcp.f32 %v2038_v60  ;;  %v5143_v22 = vld [vmem:[#allocation5_spill] sm:$0xff] }
 0x277   : > { %v3303_v44 = vpop.eup %3302 }
 0x278   : > { %2932 = vmatprep.subr.bf16.mxu0 %v2931_v34  ;;  %v2077_v62 = vmul.f32 %v3303_v44, %v4223_v38  ;;  %v3305_v6 = vpop.eup %3304  ;;  %v2076_v20 = vmul.f32 %v3303_v44, %v5143_v22  ;;  %v4508_v34 = vpop.f32.mrb[64].mxu1  ;;  %v5144_v38 = vld [vmem:[#allocation18_spill] sm:$0xff] }
 0x279   : > { %v2047_v59 = vpop.xlane.xlu1 %2046  ;;  %v4511_v47 = vpop.f32.mrb[65].mxu1  ;;  %v2080_v8 = vmul.f32 %v3305_v6, %v5146_v2 }
 0x27a   : > { %2934 = vmatpush1.bf16.xpose.msra.mxu0 %v2933_v11  ;;  %v2967_v9 = vpack.c.bf16 %v2077_v62, %v2074_v26  ;;  %v4514_v60 = vpop.f32.mrb[66].mxu1  ;;  %v2044_v11 = vpop.xlane.xlu0 %2043  ;;  %3312 = vrcp.f32 %v2047_v59  ;;  %v2969_v26 = vpack.c.bf16 %v2076_v20, %v2073_v32  ;;  %v5149_v32 = vld [vmem:[#allocation12_spill] sm:$0xff] }
 0x27b   : > { %v3307_v30 = vpop.eup %3306  ;;  %3314 = vrcp.f32 %v2044_v11 }
 0x27c   : > { %2968 = vmatprep.subr.bf16.mxu0 %v2967_v9  ;;  %v2083_v5 = vmul.f32 %v3307_v30, %v5144_v38  ;;  %v4519_v9 = vpop.f32.mrb[67].mxu1  ;;  %v2082_v61 = vmul.f32 %v3307_v30, %v5147_v27 }
 0x27d   : > { %v4522_v38 = vpop.f32.mrb[68].mxu1 }
 0x27e   : > { %v2971_v44 = vpack.c.bf16 %v2083_v5, %v2080_v8  ;;  %v5150_v8 = vld [vmem:[#allocation7_spill] sm:$0xff]  ;;  %v4529_v59 = vpop.f32.mrb[69].mxu1 }
 0x27f   : > { %v3309_v62 = vpop.eup %3308  ;;  %v4531_v5 = vpop.f32.mrb[70].mxu1 }
 0x280   : > { %v3311_v22 = vpop.eup %3310  ;;  %v2089_v2 = vmul.f32 %v3309_v62, %v5148_v36 }
 0x281   : > { %1623 = vmatmul.mubr.f32.vlgmr.msra.gmra.mrb[96].mxu0 %v4257_v39  ;;  %v2079_v39 = vmul.f32 %v3305_v6, %v5149_v32  ;;  %v2086_v20 = vmul.f32 %v3311_v22, %v5150_v8  ;;  %v5151_v6 = vld [vmem:[#allocation21_spill] sm:$0xff] }
 0x282   : > { %2970 = vmatpush1.bf16.xpose.msra.mxu0 %v2969_v26  ;;  %1627 = vmatprep.mubr.f32.mxu0 %v4299_v54 }
 0x283   : > { %2972 = vmatprep.subr.bf16.mxu0 %v2971_v44  ;;  %v2973_v54 = vpack.c.bf16 %v2082_v61, %v2079_v39  ;;  %v2975_v11 = vpack.c.bf16 %v2089_v2, %v2086_v20  ;;  %v5152_v44 = vld [vmem:[#allocation24_spill] sm:$0xff]  ;;  %v5153_v61 = vld [vmem:[#allocation6_spill] sm:$0xff] }
 0x284   : > { %v3313_v30 = vpop.eup %3312  ;;  %v2085_v2 = vmul.f32 %v3311_v22, %v5153_v61 }
 0x285   : > { %1628 = vmatmul.mubr.f32.gmra.mrb[98].mxu0 %v4297_v19  ;;  %v4535_v19 = vpop.f32.mrb[71].mxu1  ;;  %v3315_v36 = vpop.eup %3314  ;;  %v2095_v27 = vmul.f32 %v3313_v30, %v5152_v44 }
 0x286   : > { %1632 = vmatprep.mubr.f32.mxu0 %v4311_v45  ;;  %v2088_v45 = vmul.f32 %v3309_v62, %v5151_v6  ;;  %v4538_v26 = vpop.f32.mrb[72].mxu1 }
 0x287   : > { %v4545_v39 = vpop.f32.mrb[73].mxu1 }
 0x288   : > { %v4547_v8 = vpop.f32.mrb[74].mxu1 }
 0x289   : > { %1633 = vmatmul.mubr.f32.gmra.mrb[100].mxu0 %v4309_v43  ;;  %v5154_v43 = vld [vmem:[#allocation20_spill] sm:$0xff]  ;;  %v4551_v62 = vpop.f32.mrb[75].mxu1 }
 0x28a   : > { %2974 = vmatpush1.bf16.xpose.msra.mxu0 %v2973_v54  ;;  %1637 = vmatprep.mubr.f32.mxu0 %v4327_v3  ;;  %v2092_v32 = vmul.f32 %v3315_v36, %v5154_v43  ;;  %v2977_v3 = vpack.c.bf16 %v2088_v45, %v2085_v2  ;;  %v4554_v54 = vpop.f32.mrb[76].mxu1 }
 0x28b   : > { %2976 = vmatprep.subr.bf16.mxu0 %v2975_v11  ;;  %v4559_v6 = vpop.f32.mrb[77].mxu1 }
 0x28c   : > { %v2979_v20 = vpack.c.bf16 %v2095_v27, %v2092_v32 }
 0x28d   : > { %1638 = vmatmul.mubr.f32.gmra.mrb[102].mxu0 %v4322_v21  ;;  %v5155_v21 = vld [vmem:[#allocation23_spill] sm:$0xff] }
 0x28e   : > { %1642 = vmatprep.mubr.f32.mxu0 %v4339_v31  ;;  %v2094_v22 = vmul.f32 %v3313_v30, %v5155_v21  ;;  %v5156_v31 = vld [vmem:[#allocation19_spill] sm:$0xff] }
 0x28f   : > { %v2091_v11 = vmul.f32 %v3315_v36, %v5156_v31 }
 0x291   : > { %1643 = vmatmul.mubr.f32.gmra.mrb[104].mxu0 %v4337_v48  ;;  %v2981_v45 = vpack.c.bf16 %v2094_v22, %v2091_v11  ;;  %v4561_v48 = vpop.f32.mrb[78].mxu1 }
 0x292   : > { %2978 = vmatpush1.bf16.xpose.msra.mxu0 %v2977_v3  ;;  %1647 = vmatprep.mubr.f32.mxu0 %v4355_v13  ;;  %v4565_v13 = vpop.f32.mrb[79].mxu1 }
 0x293   : > { %2980 = vmatprep.subr.bf16.mxu0 %v2979_v20  ;;  %v4567_v30 = vpop.f32.mrb[80].mxu1 }
 0x295   : > { %1648 = vmatmul.mubr.f32.gmra.mrb[106].mxu0 %v4350_v46  ;;  %v4571_v46 = vpop.f32.mrb[81].mxu1 }
 0x296   : > { %1652 = vmatprep.mubr.f32.mxu0 %v4369_v41  ;;  %v4573_v41 = vpop.f32.mrb[82].mxu1 }
 0x299   : > { %1653 = vmatmul.mubr.f32.gmra.mrb[108].mxu0 %v4363_v0  ;;  %v4577_v0 = vpop.f32.mrb[83].mxu1 }
 0x29a   : > { %2982 = vmatpush1.bf16.xpose.msra.mxu0 %v2981_v45  ;;  %1657 = vmatprep.mubr.f32.mxu0 %v4385_v33  ;;  %v4579_v36 = vpop.f32.mrb[84].mxu1 }
 0x29b   : > { %v4583_v33 = vpop.f32.mrb[85].mxu1 }
 0x29d   : > { %1658 = vmatmul.mubr.f32.gmra.mrb[110].mxu0 %v4377_v15  ;;  %v4585_v15 = vpop.f32.mrb[86].mxu1 }
 0x29e   : > { %1662 = vmatprep.mubr.f32.mxu0 %v4403_v1  ;;  %v4589_v1 = vpop.f32.mrb[87].mxu1 }
 0x2a1   : > { %1663 = vmatmul.mubr.f32.gmra.mrb[112].mxu0 %v4399_v23  ;;  %v4591_v23 = vpop.f32.mrb[88].mxu1 }
 0x2a2   : > { %1667 = vmatprep.mubr.f32.mxu0 %v4419_v7  ;;  %v4595_v7 = vpop.f32.mrb[89].mxu1 }
 0x2a5   : > { %1668 = vmatmul.mubr.f32.gmra.mrb[114].mxu0 %v4413_v51  ;;  %v4597_v51 = vpop.f32.mrb[90].mxu1 }
 0x2a6   : > { %1672 = vmatprep.mubr.f32.mxu0 %v4433_v28  ;;  %v4601_v28 = vpop.f32.mrb[91].mxu1 }
 0x2a9   : > { %1673 = vmatmul.mubr.f32.gmra.mrb[116].mxu0 %v4429_v40  ;;  %v4603_v40 = vpop.f32.mrb[92].mxu1 }
 0x2aa   : > { %1677 = vmatprep.mubr.f32.mxu0 %v4443_v24  ;;  %v4607_v24 = vpop.f32.mrb[93].mxu1 }
 0x2ad   : > { %1678 = vmatmul.mubr.f32.gmra.mrb[118].mxu0 %v4441_v57  ;;  %v4609_v57 = vpop.f32.mrb[94].mxu1 }
 0x2ae   : > { %1682 = vmatprep.mubr.f32.mxu0 %v4459_v55  ;;  %v4613_v55 = vpop.f32.mrb[95].mxu1 }
 0x2b1   : > { %1683 = vmatmul.mubr.f32.gmra.mrb[120].mxu0 %v4453_v49 }
 0x2b2   : > { %1687 = vmatprep.mubr.f32.mxu0 %v4467_v29 }
 0x2b5   : > { %1688 = vmatmul.mubr.f32.gmra.mrb[122].mxu0 %v4465_v18 }
 0x2b6   : > { %1692 = vmatprep.mubr.f32.mxu0 %v4481_v10 }
 0x2b9   : > { %1693 = vmatmul.mubr.f32.gmra.mrb[124].mxu0 %v4477_v25 }
 0x2ba   : > { %1697 = vmatprep.mubr.f32.mxu0 %v4491_v14 }
 0x2bd   : > { %1698 = vmatmul.mubr.f32.gmra.mrb[126].mxu0 %v4485_v37 }
 0x2be   : > { %2184 = vmatprep.mubr.f32.mxu0 %v4511_v47 }
 0x2ce   : > { %v2050_v49 = vpop.xlane.xlu0 %2049 }
 0x2cf   : > { %3316 = vrcp.f32 %v2050_v49 }
 0x2d2   : > { %v2053_v29 = vpop.xlane.xlu1 %2052 }
 0x2d3   : > { %3318 = vrcp.f32 %v2053_v29 }
 0x2d6   : > { %v2056_v18 = vpop.xlane.xlu0 %2055 }
 0x2d7   : > { %3320 = vrcp.f32 %v2056_v18 }
 0x2d9   : > { %v3317_v44 = vpop.eup %3316 }
 0x2da   : > { %v2059_v10 = vpop.xlane.xlu1 %2058  ;;  %v2098_v25 = vmul.f32 %v3317_v44, %v4303_v50  ;;  %v2097_v2 = vmul.f32 %v3317_v44, %v4301_v58 }
 0x2db   : > { %3322 = vrcp.f32 %v2059_v10 }
 0x2dd   : > { %v3319_v27 = vpop.eup %3318 }
 0x2de   : > { %v2062_v61 = vpop.xlane.xlu0 %2061  ;;  %v2101_v14 = vmul.f32 %v3319_v27, %v4315_v52  ;;  %v2100_v37 = vmul.f32 %v3319_v27, %v4313_v4 }
 0x2df   : > { %3324 = vrcp.f32 %v2062_v61  ;;  %v5158_v61 = vld [vmem:[#allocation40_spill] sm:$0xff] }
 0x2e0   : > { %v2983_v47 = vpack.c.bf16 %v2101_v14, %v2098_v25  ;;  %v2985_v43 = vpack.c.bf16 %v2100_v37, %v2097_v2  ;;  %v5159_v14 = vld [vmem:[#allocation43_spill] sm:$0xff]  ;;  %v5160_v37 = vld [vmem:[#allocation38_spill] sm:$0xff] }
 0x2e1   : > { %v3321_v3 = vpop.eup %3320 }
 0x2e2   : > { %2984 = vmatprep.subr.bf16.mxu0 %v2983_v47  ;;  %v2104_v22 = vmul.f32 %v3321_v3, %v4331_v12  ;;  %v2103_v52 = vmul.f32 %v3321_v3, %v4329_v16 }
 0x2e3   : > { %v2065_v32 = vpop.xlane.xlu1 %2064  ;;  %2986 = vmatpush1.bf16.xpose.msra.mxu0 %v2985_v43  ;;  %v5161_v43 = vld [vmem:[#allocation42_spill] sm:$0xff] }
 0x2e4   : > { %3326 = vrcp.f32 %v2065_v32 }
 0x2e5   : > { %v3323_v20 = vpop.eup %3322 }
 0x2e6   : > { %v2068_v21 = vpop.xlane.xlu0 %2067  ;;  %v2107_v50 = vmul.f32 %v3323_v20, %v4343_v42  ;;  %v2106_v58 = vmul.f32 %v3323_v20, %v4341_v35  ;;  %v5157_v42 = vld [vmem:[#allocation35_spill] sm:$0xff] }
 0x2e7   : > { %3328 = vrcp.f32 %v2068_v21 }
 0x2e8   : > { %v2987_v31 = vpack.c.bf16 %v2107_v50, %v2104_v22  ;;  %v2989_v4 = vpack.c.bf16 %v2106_v58, %v2103_v52  ;;  %v4713_v22 = vld [vmem:[%s4978_s5 + $0x20] sm:$0xff]  ;;  %v5181_v50 = vld [vmem:[#allocation39_spill] sm:$0xff]  ;;  %v5182_v52 = vld [vmem:[#allocation36_spill] sm:$0xff] }
 0x2e9   : > { %v3325_v45 = vpop.eup %3324  ;;  %v5183_v58 = vpack.c.bf16 %v5181_v50, %v5182_v52 }
 0x2ea   : > { %2988 = vmatprep.subr.bf16.mxu0 %v2987_v31  ;;  %v2110_v29 = vmul.f32 %v3325_v45, %v4359_v63  ;;  %v2109_v12 = vmul.f32 %v3325_v45, %v4357_v56  ;;  %v5162_v56 = vmov 0.0  }
 0x2eb   : > { %v2071_v11 = vpop.xlane.xlu1 %2070  ;;  %2990 = vmatpush1.bf16.xpose.msra.mxu0 %v2989_v4  ;;  %v5184_v4 = vld [vmem:[#allocation8_spill] sm:$0xff] }
 0x2ec   : > { %3330 = vrcp.f32 %v2071_v11  ;;  %v5185_v11 = vld [vmem:[#allocation16_spill] sm:$0xff] }
 0x2ed   : > { %v5186_v45 = vpack.c.bf16 %v5184_v4, %v5185_v11 }
 0x2ee   : > { %v3327_v49 = vpop.eup %3326 }
 0x2ef   : > { %v2113_v18 = vmul.f32 %v3327_v49, %v4373_v17  ;;  %v2112_v10 = vmul.f32 %v3327_v49, %v5157_v42  ;;  %v5188_v42 = vld [vmem:[#allocation15_spill] sm:$0xff] }
 0x2f1   : > { %v2991_v16 = vpack.c.bf16 %v2113_v18, %v2110_v29  ;;  %v2993_v44 = vpack.c.bf16 %v2112_v10, %v2109_v12  ;;  %v3329_v35 = vpop.eup %3328  ;;  %v4726_v18 = vld [vmem:[%s4978_s5 + $0x28] sm:$0xff] }
 0x2f2   : > { %v2116_v25 = vmul.f32 %v3329_v35, %v5158_v61  ;;  %v2115_v47 = vmul.f32 %v3329_v35, %v5160_v37  ;;  %v5187_v12 = vld [vmem:[#allocation14_spill] sm:$0xff]  ;;  %v5191_v35 = vld [vmem:[#allocation9_spill] sm:$0xff] }
 0x2f3   : > { %2992 = vmatprep.subr.bf16.mxu0 %v2991_v16  ;;  %v5189_v10 = vpack.c.bf16 %v5187_v12, %v5188_v42  ;;  %v5194_v37 = vld [vmem:[#allocation10_spill] sm:$0xff] }
 0x2f4   : > { %2994 = vmatpush1.bf16.xpose.msra.mxu0 %v2993_v44  ;;  %v5190_v44 = vld [vmem:[#allocation45_spill] sm:$0xff] }
 0x2f6   : > { %v3331_v27 = vpop.eup %3330 }
 0x2f7   : > { %v2119_v2 = vmul.f32 %v3331_v27, %v5159_v14  ;;  %v2118_v63 = vmul.f32 %v3331_v27, %v5161_v43  ;;  %v5192_v27 = vpack.c.bf16 %v5190_v44, %v5191_v35  ;;  %v4739_v14 = vld [vmem:[%s4978_s5 + $0x30] sm:$0xff] }
 0x2f9   : > { %v2995_v32 = vpack.c.bf16 %v2119_v2, %v2116_v25  ;;  %v2997_v17 = vpack.c.bf16 %v2118_v63, %v2115_v47  ;;  %v5193_v2 = vld [vmem:[#allocation44_spill] sm:$0xff]  ;;  %v5196_v63 = vld [vmem:[#allocation49_spill] sm:$0xff] }
 0x2fa   : > { %v5195_v47 = vpack.c.bf16 %v5193_v2, %v5194_v37 }
 0x2fb   : > { %2996 = vmatprep.subr.bf16.mxu0 %v2995_v32  ;;  %v5197_v32 = vld [vmem:[#allocation47_spill] sm:$0xff] }
 0x2fc   : > { %2998 = vmatpush1.bf16.xpose.msra.mxu0 %v2997_v17  ;;  %v5198_v17 = vpack.c.bf16 %v5196_v63, %v5197_v32 }
 0x303   : > { %2185 = vmatmul.mubr.f32.vlgmr.msra.gmra.mrb[128].mxu0 %v4508_v34  ;;  %v4668_v34 = vld [vmem:[%s4978_s5] sm:$0xff] }
 0x304   : > { %2189 = vmatprep.mubr.f32.mxu0 %v4519_v9 }
 0x307   : > { %2190 = vmatmul.mubr.f32.gmra.mrb[130].mxu0 %v4514_v60 }
 0x308   : > { %2194 = vmatprep.mubr.f32.mxu0 %v4529_v59  ;;  %v4674_v59 = vld [vmem:[%s4978_s5 + $0x8] sm:$0xff] }
 0x30b   : > { %2195 = vmatmul.mubr.f32.gmra.mrb[132].mxu0 %v4522_v38 }
 0x30c   : > { %2199 = vmatprep.mubr.f32.mxu0 %v4535_v19  ;;  %v5164_v19 = vld [vmem:[#allocation25_spill] sm:$0xff] }
 0x30f   : > { %2200 = vmatmul.mubr.f32.gmra.mrb[134].mxu0 %v4531_v5  ;;  %v5163_v5 = vld [vmem:[#allocation26_spill] sm:$0xff] }
 0x310   : > { %2204 = vmatprep.mubr.f32.mxu0 %v4545_v39 }
 0x313   : > { %2205 = vmatmul.mubr.f32.gmra.mrb[136].mxu0 %v4538_v26  ;;  %v5165_v26 = vpack.c.bf16 %v5163_v5, %v5164_v19  ;;  %v5199_v5 = vld [vmem:[#allocation48_spill] sm:$0xff]  ;;  %v5200_v19 = vld [vmem:[#allocation46_spill] sm:$0xff] }
 0x314   : > { %2209 = vmatprep.mubr.f32.mxu0 %v4551_v62  ;;  %v5167_v62 = vld [vmem:[#allocation28_spill] sm:$0xff] }
 0x317   : > { %2210 = vmatmul.mubr.f32.gmra.mrb[138].mxu0 %v4547_v8  ;;  %v5166_v8 = vld [vmem:[#allocation30_spill] sm:$0xff] }
 0x318   : > { %2214 = vmatprep.mubr.f32.mxu0 %v4559_v6 }
 0x31b   : > { %2215 = vmatmul.mubr.f32.gmra.mrb[140].mxu0 %v4554_v54  ;;  %v5168_v54 = vpack.c.bf16 %v5166_v8, %v5167_v62  ;;  %v5202_v8 = vld [vmem:[#allocation51_spill] sm:$0xff] }
 0x31c   : > { %2219 = vmatprep.mubr.f32.mxu0 %v4565_v13  ;;  %v4687_v13 = vld [vmem:[%s4978_s5 + $0x10] sm:$0xff]  ;;  %v5203_v62 = vpack.c.bf16 %v4503_v53, %v5202_v8 }
 0x31f   : > { %2220 = vmatmul.mubr.f32.gmra.mrb[142].mxu0 %v4561_v48 }
 0x320   : > { %2224 = vmatprep.mubr.f32.mxu0 %v4571_v46  ;;  %v5170_v46 = vld [vmem:[#allocation27_spill] sm:$0xff] }
 0x323   : > { %2225 = vmatmul.mubr.f32.gmra.mrb[144].mxu0 %v4567_v30  ;;  %v5169_v30 = vld [vmem:[#allocation29_spill] sm:$0xff] }
 0x324   : > { %2229 = vmatprep.mubr.f32.mxu0 %v4577_v0 }
 0x327   : > { %2230 = vmatmul.mubr.f32.gmra.mrb[146].mxu0 %v4573_v41  ;;  %v5171_v41 = vpack.c.bf16 %v5169_v30, %v5170_v46  ;;  %v5204_v30 = vld [vmem:[#allocation52_spill] sm:$0xff]  ;;  %v5205_v46 = vld [vmem:[#allocation50_spill] sm:$0xff] }
 0x328   : > { %2234 = vmatprep.mubr.f32.mxu0 %v4583_v33  ;;  %v5173_v33 = vld [vmem:[#allocation32_spill] sm:$0xff] }
 0x32b   : > { %2235 = vmatmul.mubr.f32.gmra.mrb[148].mxu0 %v4579_v36  ;;  %v5172_v36 = vld [vmem:[#allocation34_spill] sm:$0xff] }
 0x32c   : > { %2239 = vmatprep.mubr.f32.mxu0 %v4589_v1 }
 0x32f   : > { %2240 = vmatmul.mubr.f32.gmra.mrb[150].mxu0 %v4585_v15  ;;  %v5174_v15 = vpack.c.bf16 %v5172_v36, %v5173_v33  ;;  %v4775_v33 = vld [vmem:[%s4978_s5 + $0x48] sm:$0xff] }
 0x330   : > { %2244 = vmatprep.mubr.f32.mxu0 %v4595_v7  ;;  %v4700_v7 = vld [vmem:[%s4978_s5 + $0x18] sm:$0xff] }
 0x333   : > { %2245 = vmatmul.mubr.f32.gmra.mrb[152].mxu0 %v4591_v23 }
 0x334   : > { %2249 = vmatprep.mubr.f32.mxu0 %v4601_v28  ;;  %v5176_v28 = vld [vmem:[#allocation31_spill] sm:$0xff] }
 0x337   : > { %2250 = vmatmul.mubr.f32.gmra.mrb[154].mxu0 %v4597_v51  ;;  %v5175_v51 = vld [vmem:[#allocation33_spill] sm:$0xff] }
 0x338   : > { %2254 = vmatprep.mubr.f32.mxu0 %v4607_v24 }
 0x33b   : > { %2255 = vmatmul.mubr.f32.gmra.mrb[156].mxu0 %v4603_v40  ;;  %v5177_v40 = vpack.c.bf16 %v5175_v51, %v5176_v28  ;;  %v4782_v51 = vld [vmem:[%s4978_s5 + $0x50] sm:$0xff] }
 0x33c   : > { %2259 = vmatprep.mubr.f32.mxu0 %v4613_v55  ;;  %v5179_v55 = vld [vmem:[#allocation37_spill] sm:$0xff] }
 0x33f   : > { %2260 = vmatmul.mubr.f32.gmra.mrb[158].mxu0 %v4609_v57  ;;  %v5178_v57 = vld [vmem:[#allocation41_spill] sm:$0xff] }
 0x340   : > { %2534 = vmatprep.mubr.f32.mxu0 %v5162_v56  ;;  %v5180_v3 = vpack.c.bf16 %v5178_v57, %v5179_v55  ;;  %v4789_v57 = vld [vmem:[%s4978_s5 + $0x58] sm:$0xff] }
 0x354   : > { %v1624_v60 = vpop.f32.mrb[96].mxu0 }
 0x355   : > { %v1703_v9 = vmul.f32 %v1624_v60, %v4668_v34  ;;  %v1626_v38 = vpop.f32.mrb[97].mxu0 }
 0x356   : > { %v4752_v38 = vld [vmem:[%s4978_s5 + $0x38] sm:$0xff] }
 0x357   : > { %1784 = vmatmul.mubr.f32.vlgmr.msra.gmra.mrb[96].mxu1 %v1703_v9 }
 0x358   : > { %3002 = vmatpush1.bf16.msra.mxu1 %v5165_v26  ;;  %v1629_v39 = vpop.f32.mrb[98].mxu0  ;;  %1789 = vmatprep.mubr.f32.mxu1 %v5162_v56  ;;  %v5201_v26 = vpack.c.bf16 %v5199_v5, %v5200_v19 }
 0x359   : > { %3004 = vmatprep.subr.bf16.mxu1 %v5168_v54  ;;  %v1704_v6 = vmul.f32 %v1629_v39, %v4674_v59  ;;  %v1631_v48 = vpop.f32.mrb[99].mxu0 }
 0x35a   : > { %v4765_v48 = vld [vmem:[%s4978_s5 + $0x40] sm:$0xff] }
 0x35b   : > { %1790 = vmatmul.mubr.f32.gmra.mrb[98].mxu1 %v1704_v6 }
 0x35c   : > { %3006 = vmatpush1.bf16.msra.mxu1 %v5171_v41  ;;  %v1634_v0 = vpop.f32.mrb[100].mxu0  ;;  %1795 = vmatprep.mubr.f32.mxu1 %v5162_v56  ;;  %v5206_v41 = vpack.c.bf16 %v5204_v30, %v5205_v46 }
 0x35d   : > { %3008 = vmatprep.subr.bf16.mxu1 %v5174_v15  ;;  %v1705_v1 = vmul.f32 %v1634_v0, %v4687_v13  ;;  %v1636_v23 = vpop.f32.mrb[101].mxu0 }
 0x35f   : > { %1796 = vmatmul.mubr.f32.gmra.mrb[100].mxu1 %v1705_v1 }
 0x360   : > { %3010 = vmatpush1.bf16.msra.mxu1 %v5177_v40  ;;  %v1639_v24 = vpop.f32.mrb[102].mxu0  ;;  %1801 = vmatprep.mubr.f32.mxu1 %v5162_v56 }
 0x361   : > { %3012 = vmatprep.subr.bf16.mxu1 %v5180_v3  ;;  %v1706_v20 = vmul.f32 %v1639_v24, %v4700_v7  ;;  %v1641_v21 = vpop.f32.mrb[103].mxu0 }
 0x362   : > { %v4796_v21 = vld [vmem:[%s4978_s5 + $0x60] sm:$0xff] }
 0x363   : > { %1802 = vmatmul.mubr.f32.gmra.mrb[102].mxu1 %v1706_v20 }
 0x364   : > { %3014 = vmatpush1.bf16.msra.mxu1 %v5183_v58  ;;  %v1644_v31 = vpop.f32.mrb[104].mxu0  ;;  %1807 = vmatprep.mubr.f32.mxu1 %v5162_v56 }
 0x365   : > { %3016 = vmatprep.subr.bf16.mxu1 %v5186_v45  ;;  %v1707_v49 = vmul.f32 %v1644_v31, %v4713_v22  ;;  %v1646_v29 = vpop.f32.mrb[105].mxu0  ;;  %v4803_v31 = vld [vmem:[%s4978_s5 + $0x68] sm:$0xff] }
 0x367   : > { %1808 = vmatmul.mubr.f32.gmra.mrb[104].mxu1 %v1707_v49  ;;  %v4810_v49 = vld [vmem:[%s4978_s5 + $0x70] sm:$0xff] }
 0x368   : > { %3018 = vmatpush1.bf16.msra.mxu1 %v5189_v10  ;;  %v1649_v16 = vpop.f32.mrb[106].mxu0  ;;  %1813 = vmatprep.mubr.f32.mxu1 %v5162_v56  ;;  %v4817_v10 = vld [vmem:[%s4978_s5 + $0x78] sm:$0xff] }
 0x369   : > { %3020 = vmatprep.subr.bf16.mxu1 %v5192_v27  ;;  %v1708_v61 = vmul.f32 %v1649_v16, %v4726_v18  ;;  %v1651_v25 = vpop.f32.mrb[107].mxu0 }
 0x36b   : > { %1814 = vmatmul.mubr.f32.gmra.mrb[106].mxu1 %v1708_v61 }
 0x36c   : > { %3022 = vmatpush1.bf16.msra.mxu1 %v5195_v47  ;;  %v1654_v43 = vpop.f32.mrb[108].mxu0  ;;  %1819 = vmatprep.mubr.f32.mxu1 %v5162_v56 }
 0x36d   : > { %3024 = vmatprep.subr.bf16.mxu1 %v5198_v17  ;;  %v1709_v60 = vmul.f32 %v1654_v43, %v4739_v14  ;;  %v1656_v9 = vpop.f32.mrb[109].mxu0 }
 0x36f   : > { %1820 = vmatmul.mubr.f32.gmra.mrb[108].mxu1 %v1709_v60 }
 0x370   : > { %3026 = vmatpush1.bf16.msra.mxu1 %v5201_v26  ;;  %v1659_v39 = vpop.f32.mrb[110].mxu0  ;;  %1825 = vmatprep.mubr.f32.mxu1 %v5162_v56 }
 0x371   : > { %3028 = vmatprep.subr.bf16.mxu1 %v5203_v62  ;;  %v1710_v54 = vmul.f32 %v1659_v39, %v4752_v38  ;;  %v1661_v6 = vpop.f32.mrb[111].mxu0 }
 0x373   : > { %1826 = vmatmul.mubr.f32.gmra.mrb[110].mxu1 %v1710_v54 }
 0x374   : > { %3030 = vmatpush1.bf16.msra.mxu1 %v5206_v41  ;;  %v1664_v0 = vpop.f32.mrb[112].mxu0  ;;  %1831 = vmatprep.mubr.f32.mxu1 %v5162_v56 }
 0x375   : > { %v1711_v36 = vmul.f32 %v1664_v0, %v4765_v48  ;;  %v1666_v53 = vpop.f32.mrb[113].mxu0 }
 0x377   : > { %1832 = vmatmul.mubr.f32.gmra.mrb[112].mxu1 %v1711_v36 }
 0x378   : > { %v1669_v15 = vpop.f32.mrb[114].mxu0  ;;  %1837 = vmatprep.mubr.f32.mxu1 %v5162_v56 }
 0x379   : > { %v1712_v1 = vmul.f32 %v1669_v15, %v4775_v33  ;;  %v1671_v23 = vpop.f32.mrb[115].mxu0 }
 0x37b   : > { %1838 = vmatmul.mubr.f32.gmra.mrb[114].mxu1 %v1712_v1 }
 0x37c   : > { %v1674_v28 = vpop.f32.mrb[116].mxu0  ;;  %1843 = vmatprep.mubr.f32.mxu1 %v5162_v56 }
 0x37d   : > { %v1713_v40 = vmul.f32 %v1674_v28, %v4782_v51  ;;  %v1676_v24 = vpop.f32.mrb[117].mxu0 }
 0x37f   : > { %1844 = vmatmul.mubr.f32.gmra.mrb[116].mxu1 %v1713_v40 }
 0x380   : > { %v1679_v55 = vpop.f32.mrb[118].mxu0  ;;  %1849 = vmatprep.mubr.f32.mxu1 %v5162_v56 }
 0x381   : > { %v1714_v3 = vmul.f32 %v1679_v55, %v4789_v57  ;;  %v1681_v20 = vpop.f32.mrb[119].mxu0 }
 0x383   : > { %1850 = vmatmul.mubr.f32.gmra.mrb[118].mxu1 %v1714_v3 }
 0x384   : > { %v1684_v50 = vpop.f32.mrb[120].mxu0  ;;  %1855 = vmatprep.mubr.f32.mxu1 %v5162_v56 }
 0x385   : > { %v1715_v52 = vmul.f32 %v1684_v50, %v4796_v21  ;;  %v1686_v58 = vpop.f32.mrb[121].mxu0 }
 0x387   : > { %1856 = vmatmul.mubr.f32.gmra.mrb[120].mxu1 %v1715_v52 }
 0x388   : > { %v1689_v4 = vpop.f32.mrb[122].mxu0  ;;  %1861 = vmatprep.mubr.f32.mxu1 %v5162_v56 }
 0x389   : > { %v1716_v11 = vmul.f32 %v1689_v4, %v4803_v31  ;;  %v1691_v45 = vpop.f32.mrb[123].mxu0 }
 0x38b   : > { %1862 = vmatmul.mubr.f32.gmra.mrb[122].mxu1 %v1716_v11 }
 0x38c   : > { %v1694_v29 = vpop.f32.mrb[124].mxu0  ;;  %1867 = vmatprep.mubr.f32.mxu1 %v5162_v56 }
 0x38d   : > { %v1717_v12 = vmul.f32 %v1694_v29, %v4810_v49  ;;  %v1696_v42 = vpop.f32.mrb[125].mxu0 }
 0x38f   : > { %1868 = vmatmul.mubr.f32.gmra.mrb[124].mxu1 %v1717_v12 }
 0x390   : > { %v1699_v16 = vpop.f32.mrb[126].mxu0  ;;  %1873 = vmatprep.mubr.f32.mxu1 %v5162_v56 }
 0x391   : > { %v1718_v44 = vmul.f32 %v1699_v16, %v4817_v10  ;;  %v1701_v35 = vpop.f32.mrb[127].mxu0 }
 0x393   : > { %1874 = vmatmul.mubr.f32.gmra.mrb[126].mxu1 %v1718_v44 }
 0x394   : > { %2345 = vmatprep.mubr.f32.mxu1 %v5162_v56 }
 0x3d6   : > { %v2186_v27 = vpop.f32.mrb[128].mxu0 }
 0x3d7   : > { %v2265_v61 = vmul.f32 %v2186_v27, %v4668_v34  ;;  %v2188_v25 = vpop.f32.mrb[129].mxu0 }
 0x3d9   : > { %2346 = vmatmul.mubr.f32.vlgmr.msra.gmra.mrb[128].mxu1 %v2265_v61 }
 0x3da   : > { %v2191_v2 = vpop.f32.mrb[130].mxu0  ;;  %2351 = vmatprep.mubr.f32.mxu1 %v5162_v56 }
 0x3db   : > { %v2266_v37 = vmul.f32 %v2191_v2, %v4674_v59  ;;  %v2193_v47 = vpop.f32.mrb[131].mxu0 }
 0x3dd   : > { %2352 = vmatmul.mubr.f32.gmra.mrb[130].mxu1 %v2266_v37 }
 0x3de   : > { %v2196_v43 = vpop.f32.mrb[132].mxu0  ;;  %2357 = vmatprep.mubr.f32.mxu1 %v5162_v56 }
 0x3df   : > { %v2267_v63 = vmul.f32 %v2196_v43, %v4687_v13  ;;  %v2198_v32 = vpop.f32.mrb[133].mxu0 }
 0x3e1   : > { %2358 = vmatmul.mubr.f32.gmra.mrb[132].mxu1 %v2267_v63 }
 0x3e2   : > { %v2201_v17 = vpop.f32.mrb[134].mxu0  ;;  %2363 = vmatprep.mubr.f32.mxu1 %v5162_v56 }
 0x3e3   : > { %v2268_v34 = vmul.f32 %v2201_v17, %v4700_v7  ;;  %v2203_v60 = vpop.f32.mrb[135].mxu0 }
 0x3e5   : > { %2364 = vmatmul.mubr.f32.gmra.mrb[134].mxu1 %v2268_v34 }
 0x3e6   : > { %v2206_v9 = vpop.f32.mrb[136].mxu0  ;;  %2369 = vmatprep.mubr.f32.mxu1 %v5162_v56 }
 0x3e7   : > { %v2269_v59 = vmul.f32 %v2206_v9, %v4713_v22  ;;  %v2208_v5 = vpop.f32.mrb[137].mxu0 }
 0x3e9   : > { %2370 = vmatmul.mubr.f32.gmra.mrb[136].mxu1 %v2269_v59 }
 0x3ea   : > { %v2211_v19 = vpop.f32.mrb[138].mxu0  ;;  %2375 = vmatprep.mubr.f32.mxu1 %v5162_v56 }
 0x3eb   : > { %v2270_v13 = vmul.f32 %v2211_v19, %v4726_v18  ;;  %v2213_v26 = vpop.f32.mrb[139].mxu0 }
 0x3ed   : > { %2376 = vmatmul.mubr.f32.gmra.mrb[138].mxu1 %v2270_v13 }
 0x3ee   : > { %v2216_v39 = vpop.f32.mrb[140].mxu0  ;;  %2381 = vmatprep.mubr.f32.mxu1 %v5162_v56 }
 0x3ef   : > { %v2271_v7 = vmul.f32 %v2216_v39, %v4739_v14  ;;  %v2218_v8 = vpop.f32.mrb[141].mxu0 }
 0x3f1   : > { %2382 = vmatmul.mubr.f32.gmra.mrb[140].mxu1 %v2271_v7 }
 0x3f2   : > { %v2221_v62 = vpop.f32.mrb[142].mxu0  ;;  %2387 = vmatprep.mubr.f32.mxu1 %v5162_v56 }
 0x3f3   : > { %v2272_v22 = vmul.f32 %v2221_v62, %v4752_v38  ;;  %v2223_v54 = vpop.f32.mrb[143].mxu0 }
 0x3f5   : > { %2388 = vmatmul.mubr.f32.gmra.mrb[142].mxu1 %v2272_v22 }
 0x3f6   : > { %v2226_v6 = vpop.f32.mrb[144].mxu0  ;;  %2393 = vmatprep.mubr.f32.mxu1 %v5162_v56 }
 0x3f7   : > { %v2273_v18 = vmul.f32 %v2226_v6, %v4765_v48  ;;  %v2228_v30 = vpop.f32.mrb[145].mxu0 }
 0x3f9   : > { %2394 = vmatmul.mubr.f32.gmra.mrb[144].mxu1 %v2273_v18 }
 0x3fa   : > { %v2231_v46 = vpop.f32.mrb[146].mxu0  ;;  %2399 = vmatprep.mubr.f32.mxu1 %v5162_v56 }
 0x3fb   : > { %v2274_v14 = vmul.f32 %v2231_v46, %v4775_v33  ;;  %v2233_v41 = vpop.f32.mrb[147].mxu0 }
 0x3fd   : > { %2400 = vmatmul.mubr.f32.gmra.mrb[146].mxu1 %v2274_v14 }
 0x3fe   : > { %v2236_v0 = vpop.f32.mrb[148].mxu0  ;;  %2405 = vmatprep.mubr.f32.mxu1 %v5162_v56 }
 0x3ff   : > { %v2275_v38 = vmul.f32 %v2236_v0, %v4782_v51  ;;  %v2238_v36 = vpop.f32.mrb[149].mxu0 }
 0x401   : > { %2406 = vmatmul.mubr.f32.gmra.mrb[148].mxu1 %v2275_v38 }
 0x402   : > { %v2241_v53 = vpop.f32.mrb[150].mxu0  ;;  %2411 = vmatprep.mubr.f32.mxu1 %v5162_v56 }
 0x403   : > { %v2276_v48 = vmul.f32 %v2241_v53, %v4789_v57  ;;  %v2243_v15 = vpop.f32.mrb[151].mxu0  ;;  %v4857_v53 = vld [vmem:[%s4976_s3] sm:$0xff] }
 0x404   : > { %v4871_v15 = vld [vmem:[%s4976_s3 + $0x10] sm:$0xff] }
 0x405   : > { %2412 = vmatmul.mubr.f32.gmra.mrb[150].mxu1 %v2276_v48  ;;  %v4864_v48 = vld [vmem:[%s4976_s3 + $0x8] sm:$0xff] }
 0x406   : > { %v2246_v1 = vpop.f32.mrb[152].mxu0  ;;  %2417 = vmatprep.mubr.f32.mxu1 %v5162_v56 }
 0x407   : > { %v2277_v33 = vmul.f32 %v2246_v1, %v4796_v21  ;;  %v2248_v23 = vpop.f32.mrb[153].mxu0  ;;  %v4878_v1 = vld [vmem:[%s4976_s3 + $0x18] sm:$0xff] }
 0x408   : > { %v2446_v23 = vld [vmem:[%s4977_s4] sm:$0xff] }
 0x409   : > { %2418 = vmatmul.mubr.f32.gmra.mrb[152].mxu1 %v2277_v33  ;;  %v2447_v33 = vld [vmem:[%s4977_s4 + $0x8] sm:$0xff] }
 0x40a   : > { %v2251_v28 = vpop.f32.mrb[154].mxu0  ;;  %2423 = vmatprep.mubr.f32.mxu1 %v5162_v56 }
 0x40b   : > { %v2278_v51 = vmul.f32 %v2251_v28, %v4803_v31  ;;  %v2253_v40 = vpop.f32.mrb[155].mxu0  ;;  %v3397_v28 = vmov 0  }
 0x40c   : > { %3139 = vset.pattern.permute.xlu1 %v3397_v28  ;;  %3138 = vset.pattern.permute.xlu0 %v3397_v28  ;;  %v2449_v40 = vld [vmem:[%s4977_s4 + $0x18] sm:$0xff] }
 0x40d   : > { %2424 = vmatmul.mubr.f32.gmra.mrb[154].mxu1 %v2278_v51  ;;  %2457 = vperm.xlu1 %3139, %v2447_v33   ;;  %v2448_v51 = vld [vmem:[%s4977_s4 + $0x10] sm:$0xff] }
 0x40e   : > { %v2256_v24 = vpop.f32.mrb[156].mxu0  ;;  %2429 = vmatprep.mubr.f32.mxu1 %v5162_v56  ;;  %2452 = vperm.xlu0 %3138, %v2446_v23  }
 0x40f   : > { %v2279_v57 = vmul.f32 %v2256_v24, %v4810_v49  ;;  %v2258_v55 = vpop.f32.mrb[157].mxu0 }
 0x411   : > { %2430 = vmatmul.mubr.f32.gmra.mrb[156].mxu1 %v2279_v57  ;;  %2462 = vperm.xlu1 %3139, %v2448_v51  }
 0x412   : > { %v2261_v3 = vpop.f32.mrb[158].mxu0  ;;  %2435 = vmatprep.mubr.f32.mxu1 %v5162_v56 }
 0x413   : > { %v2280_v20 = vmul.f32 %v2261_v3, %v4817_v10  ;;  %v2263_v21 = vpop.f32.mrb[159].mxu0 }
 0x415   : > { %2436 = vmatmul.mubr.f32.gmra.mrb[158].mxu1 %v2280_v20  ;;  %2467 = vperm.xlu1 %3139, %v2449_v40  }
 0x416   : > { %2623 = vmatprep.mubr.f32.mxu1 %v5162_v56 }
 0x42a   : > { %v1785_v50 = vpop.f32.mrb[96].mxu1 }
 0x42b   : > { %v1787_v52 = vpop.f32.mrb[97].mxu1 }
 0x42e   : > { %v1791_v58 = vpop.f32.mrb[98].mxu1 }
 0x42f   : > { %v3033_v31 = vpack.c.bf16 %v1791_v58, %v1785_v50  ;;  %v1793_v4 = vpop.f32.mrb[99].mxu1 }
 0x430   : > { %v3031_v11 = vpack.c.bf16 %v1793_v4, %v1787_v52 }
 0x432   : > { %3032 = vmatprep.subr.bf16.mxu0 %v3031_v11  ;;  %v1797_v45 = vpop.f32.mrb[100].mxu1 }
 0x433   : > { %3034 = vmatpush1.bf16.msra.mxu0 %v3033_v31  ;;  %v1799_v49 = vpop.f32.mrb[101].mxu1 }
 0x436   : > { %v1803_v29 = vpop.f32.mrb[102].mxu1 }
 0x437   : > { %v3037_v12 = vpack.c.bf16 %v1803_v29, %v1797_v45  ;;  %v1805_v42 = vpop.f32.mrb[103].mxu1 }
 0x438   : > { %v3035_v16 = vpack.c.bf16 %v1805_v42, %v1799_v49 }
 0x43a   : > { %3036 = vmatprep.subr.bf16.mxu0 %v3035_v16  ;;  %v1809_v10 = vpop.f32.mrb[104].mxu1 }
 0x43b   : > { %3038 = vmatpush1.bf16.msra.mxu0 %v3037_v12  ;;  %v1811_v44 = vpop.f32.mrb[105].mxu1 }
 0x43e   : > { %v1815_v35 = vpop.f32.mrb[106].mxu1 }
 0x43f   : > { %v3041_v27 = vpack.c.bf16 %v1815_v35, %v1809_v10  ;;  %v1817_v61 = vpop.f32.mrb[107].mxu1 }
 0x440   : > { %v3039_v25 = vpack.c.bf16 %v1817_v61, %v1811_v44 }
 0x442   : > { %3040 = vmatprep.subr.bf16.mxu0 %v3039_v25  ;;  %v1821_v2 = vpop.f32.mrb[108].mxu1 }
 0x443   : > { %3042 = vmatpush1.bf16.msra.mxu0 %v3041_v27  ;;  %v1823_v37 = vpop.f32.mrb[109].mxu1 }
 0x446   : > { %v1827_v47 = vpop.f32.mrb[110].mxu1 }
 0x447   : > { %v3045_v43 = vpack.c.bf16 %v1827_v47, %v1821_v2  ;;  %v1829_v63 = vpop.f32.mrb[111].mxu1 }
 0x448   : > { %v3043_v32 = vpack.c.bf16 %v1829_v63, %v1823_v37 }
 0x44a   : > { %3044 = vmatprep.subr.bf16.mxu0 %v3043_v32  ;;  %v1833_v17 = vpop.f32.mrb[112].mxu1 }
 0x44b   : > { %3046 = vmatpush1.bf16.msra.mxu0 %v3045_v43  ;;  %v1835_v34 = vpop.f32.mrb[113].mxu1 }
 0x44e   : > { %v1839_v60 = vpop.f32.mrb[114].mxu1 }
 0x44f   : > { %v3049_v9 = vpack.c.bf16 %v1839_v60, %v1833_v17  ;;  %v1841_v59 = vpop.f32.mrb[115].mxu1 }
 0x450   : > { %v3047_v5 = vpack.c.bf16 %v1841_v59, %v1835_v34 }
 0x452   : > { %3048 = vmatprep.subr.bf16.mxu0 %v3047_v5  ;;  %v1845_v19 = vpop.f32.mrb[116].mxu1 }
 0x453   : > { %3050 = vmatpush1.bf16.msra.mxu0 %v3049_v9  ;;  %v1847_v13 = vpop.f32.mrb[117].mxu1 }
 0x456   : > { %v1851_v26 = vpop.f32.mrb[118].mxu1 }
 0x457   : > { %v3053_v39 = vpack.c.bf16 %v1851_v26, %v1845_v19  ;;  %v1853_v7 = vpop.f32.mrb[119].mxu1 }
 0x458   : > { %v3051_v8 = vpack.c.bf16 %v1853_v7, %v1847_v13 }
 0x45a   : > { %3052 = vmatprep.subr.bf16.mxu0 %v3051_v8  ;;  %v1857_v62 = vpop.f32.mrb[120].mxu1 }
 0x45b   : > { %3054 = vmatpush1.bf16.msra.mxu0 %v3053_v39  ;;  %v1859_v22 = vpop.f32.mrb[121].mxu1 }
 0x45e   : > { %v1863_v54 = vpop.f32.mrb[122].mxu1 }
 0x45f   : > { %v3057_v6 = vpack.c.bf16 %v1863_v54, %v1857_v62  ;;  %v1865_v18 = vpop.f32.mrb[123].mxu1 }
 0x460   : > { %v3055_v30 = vpack.c.bf16 %v1865_v18, %v1859_v22 }
 0x462   : > { %3056 = vmatprep.subr.bf16.mxu0 %v3055_v30  ;;  %v1869_v46 = vpop.f32.mrb[124].mxu1 }
 0x463   : > { %3058 = vmatpush1.bf16.msra.mxu0 %v3057_v6  ;;  %v1871_v14 = vpop.f32.mrb[125].mxu1 }
 0x466   : > { %v1875_v41 = vpop.f32.mrb[126].mxu1 }
 0x467   : > { %v3061_v0 = vpack.c.bf16 %v1875_v41, %v1869_v46  ;;  %v1877_v38 = vpop.f32.mrb[127].mxu1 }
 0x468   : > { %v3059_v36 = vpack.c.bf16 %v1877_v38, %v1871_v14 }
 0x46a   : > { %3060 = vmatprep.subr.bf16.mxu0 %v3059_v36 }
 0x46b   : > { %3062 = vmatpush1.bf16.msra.mxu0 %v3061_v0 }
 0x46e   : > { %2535 = vmatmul.mubr.f32.vlgmr.msra.gmra.mrb[160].mxu0 %v4857_v53 }
 0x46f   : > { %2540 = vmatprep.mubr.f32.mxu0 %v5162_v56 }
 0x472   : > { %2541 = vmatmul.mubr.f32.gmra.mrb[162].mxu0 %v4864_v48 }
 0x473   : > { %2546 = vmatprep.mubr.f32.mxu0 %v5162_v56 }
 0x476   : > { %2547 = vmatmul.mubr.f32.gmra.mrb[164].mxu0 %v4871_v15 }
 0x477   : > { %2552 = vmatprep.mubr.f32.mxu0 %v5162_v56 }
 0x47a   : > { %2553 = vmatmul.mubr.f32.gmra.mrb[166].mxu0 %v4878_v1 }
 0x48c   : > { %v2458_v46 = vpop.permute.xlu1 %2457 }
 0x48d   : > { %v2453_v0 = vpop.permute.xlu0 %2452 }
 0x4ac   : > { %v2347_v24 = vpop.f32.mrb[128].mxu1 }
 0x4ad   : > { %v2349_v57 = vpop.f32.mrb[129].mxu1 }
 0x4b0   : > { %v2353_v55 = vpop.f32.mrb[130].mxu1 }
 0x4b1   : > { %v3065_v3 = vpack.c.bf16 %v2353_v55, %v2347_v24  ;;  %v2355_v20 = vpop.f32.mrb[131].mxu1 }
 0x4b2   : > { %v3063_v21 = vpack.c.bf16 %v2355_v20, %v2349_v57 }
 0x4b4   : > { %v2359_v50 = vpop.f32.mrb[132].mxu1  ;;  %3064 = vmatprep.subr.bf16.mxu1 %v3063_v21 }
 0x4b5   : > { %v2361_v52 = vpop.f32.mrb[133].mxu1  ;;  %3066 = vmatpush1.bf16.msra.mxu1 %v3065_v3 }
 0x4b8   : > { %v2365_v58 = vpop.f32.mrb[134].mxu1 }
 0x4b9   : > { %v3069_v31 = vpack.c.bf16 %v2365_v58, %v2359_v50  ;;  %v2367_v4 = vpop.f32.mrb[135].mxu1 }
 0x4ba   : > { %v3067_v11 = vpack.c.bf16 %v2367_v4, %v2361_v52 }
 0x4bc   : > { %v2371_v45 = vpop.f32.mrb[136].mxu1  ;;  %3068 = vmatprep.subr.bf16.mxu1 %v3067_v11 }
 0x4bd   : > { %v2373_v49 = vpop.f32.mrb[137].mxu1  ;;  %3070 = vmatpush1.bf16.msra.mxu1 %v3069_v31 }
 0x4c0   : > { %v2377_v29 = vpop.f32.mrb[138].mxu1 }
 0x4c1   : > { %v3073_v12 = vpack.c.bf16 %v2377_v29, %v2371_v45  ;;  %v2379_v42 = vpop.f32.mrb[139].mxu1 }
 0x4c2   : > { %v3071_v16 = vpack.c.bf16 %v2379_v42, %v2373_v49 }
 0x4c4   : > { %v2383_v10 = vpop.f32.mrb[140].mxu1  ;;  %3072 = vmatprep.subr.bf16.mxu1 %v3071_v16 }
 0x4c5   : > { %v2385_v44 = vpop.f32.mrb[141].mxu1  ;;  %3074 = vmatpush1.bf16.msra.mxu1 %v3073_v12 }
 0x4c8   : > { %v2389_v35 = vpop.f32.mrb[142].mxu1 }
 0x4c9   : > { %v3077_v27 = vpack.c.bf16 %v2389_v35, %v2383_v10  ;;  %v2391_v61 = vpop.f32.mrb[143].mxu1 }
 0x4ca   : > { %v3075_v25 = vpack.c.bf16 %v2391_v61, %v2385_v44 }
 0x4cc   : > { %v2395_v2 = vpop.f32.mrb[144].mxu1  ;;  %3076 = vmatprep.subr.bf16.mxu1 %v3075_v25 }
 0x4cd   : > { %v2397_v37 = vpop.f32.mrb[145].mxu1  ;;  %3078 = vmatpush1.bf16.msra.mxu1 %v3077_v27 }
 0x4d0   : > { %v2401_v47 = vpop.f32.mrb[146].mxu1 }
 0x4d1   : > { %v3081_v43 = vpack.c.bf16 %v2401_v47, %v2395_v2  ;;  %v2403_v63 = vpop.f32.mrb[147].mxu1 }
 0x4d2   : > { %v3079_v32 = vpack.c.bf16 %v2403_v63, %v2397_v37 }
 0x4d4   : > { %v2407_v17 = vpop.f32.mrb[148].mxu1  ;;  %3080 = vmatprep.subr.bf16.mxu1 %v3079_v32 }
 0x4d5   : > { %v2409_v34 = vpop.f32.mrb[149].mxu1  ;;  %3082 = vmatpush1.bf16.msra.mxu1 %v3081_v43 }
 0x4d8   : > { %v2413_v60 = vpop.f32.mrb[150].mxu1 }
 0x4d9   : > { %v3085_v9 = vpack.c.bf16 %v2413_v60, %v2407_v17  ;;  %v2415_v59 = vpop.f32.mrb[151].mxu1 }
 0x4da   : > { %v3083_v5 = vpack.c.bf16 %v2415_v59, %v2409_v34 }
 0x4dc   : > { %v2419_v19 = vpop.f32.mrb[152].mxu1  ;;  %3084 = vmatprep.subr.bf16.mxu1 %v3083_v5 }
 0x4dd   : > { %v2421_v13 = vpop.f32.mrb[153].mxu1  ;;  %3086 = vmatpush1.bf16.msra.mxu1 %v3085_v9 }
 0x4e0   : > { %v2425_v26 = vpop.f32.mrb[154].mxu1 }
 0x4e1   : > { %v3089_v39 = vpack.c.bf16 %v2425_v26, %v2419_v19  ;;  %v2427_v7 = vpop.f32.mrb[155].mxu1 }
 0x4e2   : > { %v3087_v8 = vpack.c.bf16 %v2427_v7, %v2421_v13 }
 0x4e4   : > { %v2431_v62 = vpop.f32.mrb[156].mxu1  ;;  %3088 = vmatprep.subr.bf16.mxu1 %v3087_v8 }
 0x4e5   : > { %v2433_v22 = vpop.f32.mrb[157].mxu1  ;;  %3090 = vmatpush1.bf16.msra.mxu1 %v3089_v39 }
 0x4e8   : > { %v2437_v54 = vpop.f32.mrb[158].mxu1 }
 0x4e9   : > { %v3093_v6 = vpack.c.bf16 %v2437_v54, %v2431_v62  ;;  %v2439_v18 = vpop.f32.mrb[159].mxu1 }
 0x4ea   : > { %v3091_v30 = vpack.c.bf16 %v2439_v18, %v2433_v22 }
 0x4ec   : > { %3092 = vmatprep.subr.bf16.mxu1 %v3091_v30 }
 0x4ed   : > { %3094 = vmatpush1.bf16.msra.mxu1 %v3093_v6 }
 0x4f0   : > { %2624 = vmatmul.mubr.f32.vlgmr.msra.gmra.mrb[160].mxu1 %v4857_v53 }
 0x4f1   : > { %2629 = vmatprep.mubr.f32.mxu1 %v5162_v56 }
 0x4f4   : > { %2630 = vmatmul.mubr.f32.gmra.mrb[162].mxu1 %v4864_v48  ;;  %v2463_v48 = vpop.permute.xlu1 %2462 }
 0x4f5   : > { %2635 = vmatprep.mubr.f32.mxu1 %v5162_v56 }
 0x4f8   : > { %2636 = vmatmul.mubr.f32.gmra.mrb[164].mxu1 %v4871_v15  ;;  %v2468_v40 = vpop.permute.xlu1 %2467 }
 0x4f9   : > { %2641 = vmatprep.mubr.f32.mxu1 %v5162_v56 }
 0x4fc   : > { %2642 = vmatmul.mubr.f32.gmra.mrb[166].mxu1 %v4878_v1 }
 0x541   : > { %v2536_v14 = vpop.f32.mrb[160].mxu0 }
 0x542   : > { %v2538_v41 = vpop.f32.mrb[161].mxu0  ;;  %v2537_v38 = vadd.f32 %v2536_v14, %v2453_v0 }
 0x543   : > { %v2539_v36 = vadd.f32 %v2538_v41, %v2453_v0 }
 0x544   : > { %2648 = vst [vmem:[%s4903_s10] sm:$0xff] %v2537_v38 }
 0x545   : > { %v2542_v53 = vpop.f32.mrb[162].mxu0  ;;  %2649 = vst [vmem:[%s4903_s10 + $0x8] sm:$0xff] %v2539_v36 }
 0x546   : > { %v2543_v56 = vadd.f32 %v2542_v53, %v2458_v46  ;;  %v2544_v15 = vpop.f32.mrb[163].mxu0 }
 0x547   : > { %v2545_v1 = vadd.f32 %v2544_v15, %v2458_v46 }
 0x548   : > { %2650 = vst [vmem:[%s4903_s10 + $0x10] sm:$0xff] %v2543_v56 }
 0x549   : > { %2651 = vst [vmem:[%s4903_s10 + $0x18] sm:$0xff] %v2545_v1  ;;  %v2548_v33 = vpop.f32.mrb[164].mxu0 }
 0x54a   : > { %v2549_v23 = vadd.f32 %v2548_v33, %v2463_v48  ;;  %v2550_v28 = vpop.f32.mrb[165].mxu0 }
 0x54b   : > { %v2551_v51 = vadd.f32 %v2550_v28, %v2463_v48 }
 0x54c   : > { %2652 = vst [vmem:[%s4903_s10 + $0x20] sm:$0xff] %v2549_v23 }
 0x54d   : > { %2653 = vst [vmem:[%s4903_s10 + $0x28] sm:$0xff] %v2551_v51  ;;  %v2554_v24 = vpop.f32.mrb[166].mxu0 }
 0x54e   : > { %v2555_v57 = vadd.f32 %v2554_v24, %v2468_v40  ;;  %v2556_v55 = vpop.f32.mrb[167].mxu0 }
 0x54f   : > { %v2557_v3 = vadd.f32 %v2556_v55, %v2468_v40 }
 0x550   : > { %2654 = vst [vmem:[%s4903_s10 + $0x30] sm:$0xff] %v2555_v57 }
 0x551   : > { %2655 = vst [vmem:[%s4903_s10 + $0x38] sm:$0xff] %v2557_v3 }
 0x5c3   : > { %v2625_v20 = vpop.f32.mrb[160].mxu1 }
 0x5c4   : > { %v2626_v21 = vadd.f32 %v2625_v20, %v2453_v0  ;;  %v2627_v50 = vpop.f32.mrb[161].mxu1 }
 0x5c5   : > { %v2628_v52 = vadd.f32 %v2627_v50, %v2453_v0 }
 0x5c6   : > { %2854 = vst [vmem:[%s4903_s10 + $0x40] sm:$0xff] %v2626_v21 }
 0x5c7   : > { %2855 = vst [vmem:[%s4903_s10 + $0x48] sm:$0xff] %v2628_v52  ;;  %v2631_v58 = vpop.f32.mrb[162].mxu1 }
 0x5c8   : > { %v2632_v31 = vadd.f32 %v2631_v58, %v2458_v46  ;;  %v2633_v4 = vpop.f32.mrb[163].mxu1 }
 0x5c9   : > { %v2634_v11 = vadd.f32 %v2633_v4, %v2458_v46 }
 0x5ca   : > { %2856 = vst [vmem:[%s4903_s10 + $0x50] sm:$0xff] %v2632_v31 }
 0x5cb   : > { %2857 = vst [vmem:[%s4903_s10 + $0x58] sm:$0xff] %v2634_v11  ;;  %v2637_v45 = vpop.f32.mrb[164].mxu1 }
 0x5cc   : > { %v2638_v49 = vadd.f32 %v2637_v45, %v2463_v48  ;;  %v2639_v29 = vpop.f32.mrb[165].mxu1 }
 0x5cd   : > { %v2640_v12 = vadd.f32 %v2639_v29, %v2463_v48 }
 0x5ce   : > { %2858 = vst [vmem:[%s4903_s10 + $0x60] sm:$0xff] %v2638_v49 }
 0x5cf   : > { %2859 = vst [vmem:[%s4903_s10 + $0x68] sm:$0xff] %v2640_v12  ;;  %v2643_v42 = vpop.f32.mrb[166].mxu1 }
 0x5d0   : > { %v2644_v16 = vadd.f32 %v2643_v42, %v2468_v40  ;;  %v2645_v10 = vpop.f32.mrb[167].mxu1 }
 0x5d1   : > { %v2646_v44 = vadd.f32 %v2645_v10, %v2468_v40 }
 0x5d2   : > { %2860 = vst [vmem:[%s4903_s10 + $0x70] sm:$0xff] %v2644_v16 }
 0x5d3   : > { %2861 = vst [vmem:[%s4903_s10 + $0x78] sm:$0xff] %v2646_v44 }
 0x5d4   : > { %3345 = shalt.err (!%p3342_p3)
}
 0x5d5   : > { %s3346_s20 = scalar_lea.hbm %s4924_s15, 2048  ;;  %s3350_s29 = scalar_lea.hbm %s4979_s6, 4096 }
 0x5d6   : > { %p3347_p4 = scmp.ne.s32.totalorder %s4924_s15, %s3346_s20  ;;  %p3351_p9 = scmp.lt.u32.totalorder %s4924_s15, %s4979_s6 }
 0x5d7   : > { %p3352_p10 = scmp.lt.u32.totalorder %s3350_s29, %s3346_s20  ;;  %p3354_p12 = scmp.lt.u32.totalorder %s3346_s20, %s4924_s15 }
 0x5d8   : > { %p3348_p7 = pnand %p3347_p4, %p3474_p5 }
 0x5d9   : > { %p3353_p11 = por %p3352_p10, %p3351_p9 }
 0x5da   : > { %p3349_p8 = pneg %p3348_p7 }
 0x5db   : > { %p3355_p13 = por %p3354_p12, %p3353_p11 }
 0x5dd   : > { %p3356_p0 = pnand %p3355_p13, %p3349_p8 }
 0x5df   : > { %3359 = shalt.err (!%p3356_p0)
}
 0x5e0   : > { %s3399_s11 = smov 256   ;;  %s3400_s13 = smov 16  }
 0x5e1   : > { %3095 = dma.vmem_to_hbm [thread:$0]  (%p3474_p5), %s4926_s12, 2048, %s4924_s15, %s4932_s25, %s3399_s11, %s3399_s11, %s3400_s13  }
 0x5e2 PF: > { %p3101_p1 = scmp.ge.s32.totalorder %s3394_s24, 2  ;;  %s2695_s14 = sand.u32 1, %s3382_s21  }
 0x5e3   : > { %s2696_s16 = scalar_lea.sflag [#allocation3], %s2695_s14 }
 0x5e4   : > { %p3098_p2 = pnand %p3101_p1, %p3478_p6 }
 0x5e6   : > { %3377 = dma.done.wait (!%p3098_p2), %s2696_s16, 2048  }
 0x5e7   : > { %3379 = vsyncadd (!%p3098_p2), %s2696_s16, 4294965248  ;;  %p16_p3 = scmp.ge.s32.totalorder %s3461_s27, 4   ;;  %s5207_s21 = smov %s3386_s22 }
 0x5e8   : > { %s5208_s22 = smov %s3390_s23  ;;  %s5209_s23 = smov %s3472_s30 }
 0x5e9   : > { %s5210_s24 = smov %s3461_s27  ;;  %18 = sbr.rel (!%p16_p3) target bundleno = 3 (0x3), region = 81 }
 0x5f0   :  { %2701 = vsyncpa [#allocation3], 1 }
 0x5f1   :  { %2703 = vsyncpa [#allocation3 + $0x1], 1 }

</bundles_post_ra>
